<compile_context>
chip_gen: v5e
topology: v5e:2x2
jax: 0.10.0
libtpu: 0.0.40
codegen_flags: <defaults>
</compile_context>

<pallas_src>
import jax
import jax.numpy as jnp
from jax.experimental import pallas as pl
from jax.experimental.pallas import tpu as pltpu


def _leaky_relu(x, slope=0.1):
    return jnp.where(x > 0, x, slope * x)


def _round_up(x, m):
    return ((x + m - 1) // m) * m


def _disc_kernel(x_ref, w1_ref, w2_ref, w3_ref, o_ref):
    # In-kernel cast of the streamed f32 activations to bf16 MXU operands.
    x = x_ref[...].astype(jnp.bfloat16)
    # Layer 1 (MXU): (tb, 20F)bf16 @ (20F, 5F)bf16 -> f32 accumulate
    h = jnp.dot(x, w1_ref[...], preferred_element_type=jnp.float32)
    h = _leaky_relu(h)                              # f32 on VPU
    # Layer 2 (MXU)
    h = jnp.dot(h.astype(jnp.bfloat16), w2_ref[...],
                preferred_element_type=jnp.float32)
    h = _leaky_relu(h)                              # (tb, F) f32
    # Layer 3 (MXU matvec, N=1): MXU has plenty of slack; avoids the XLU
    # transpose + sublane reduce of the previous version.
    o_ref[...] = jnp.dot(h.astype(jnp.bfloat16), w3_ref[...],
                         preferred_element_type=jnp.float32).astype(o_ref.dtype)


def prepare_params(w1, w2, w3):
    """One-time bf16 cast of (in, out)-layout weights for the MXU.

    Do this once at init / parameter-load time, NOT per forward call."""
    return (w1.astype(jnp.bfloat16),
            w2.astype(jnp.bfloat16),
            w3.reshape(w3.shape[0], 1).astype(jnp.bfloat16))


def discriminator_double3(x, w1b, w2b, w3b, *, block_b=1024):
    """x: (B, 20F) f32; w1b: (20F, 5F) bf16; w2b: (5F, F) bf16; w3b: (F, 1) bf16.

    Returns (B, 1) in x.dtype."""
    B, d_in = x.shape
    assert w1b.shape[0] == d_in
    d_h1 = w1b.shape[1]
    d_h2 = w2b.shape[1]
    assert w2b.shape[0] == d_h1 and w3b.shape == (d_h2, 1)

    # Batch tile: multiple of 128 rows; pick it so the grid has >= 2 steps
    # whenever B allows, so the "parallel" batch axis can shard across v7x's
    # two TensorCores (no-op but harmless on single-TC v5e/v6e).
    block_b = _round_up(block_b, 128)
    tb = min(block_b, max(128, _round_up(pl.cdiv(B, 2), 128)))
    grid = (pl.cdiv(B, tb),)   # last tile may be partial; Pallas masks the edge

    flops = 2 * B * (d_in * d_h1 + d_h1 * d_h2 + d_h2)
    bytes_accessed = (B * d_in * 4                   # x stream (f32)
                      + d_in * d_h1 * 2 + d_h1 * d_h2 * 2 + d_h2 * 2  # weights
                      + B * 4)                       # output

    out = pl.pallas_call(
        _disc_kernel,
        out_shape=jax.ShapeDtypeStruct((B, 1), jnp.float32),
        grid_spec=pltpu.PrefetchScalarGridSpec(
            num_scalar_prefetch=0,
            grid=grid,
            in_specs=[
                # activations stream per grid step (f32, cast in-kernel)
                pl.BlockSpec((tb, d_in), lambda i: (i, 0)),
                # weights: constant index_map -> VMEM-resident, no re-DMA
                pl.BlockSpec((d_in, d_h1), lambda i: (0, 0)),
                pl.BlockSpec((d_h1, d_h2), lambda i: (0, 0)),
                pl.BlockSpec((d_h2, 1), lambda i: (0, 0)),
            ],
            out_specs=pl.BlockSpec((tb, 1), lambda i: (i, 0)),
        ),
        compiler_params=pltpu.CompilerParams(
            dimension_semantics=("parallel",),     # shards batch across TCs on v7x
            vmem_limit_bytes=32 * 1024 * 1024,     # tiles are small; fits all gens
        ),
        cost_estimate=pl.CostEstimate(
            flops=flops, transcendentals=0, bytes_accessed=bytes_accessed),
    )(x, w1b, w2b, w3b)

    return out.astype(x.dtype)


def init_params(key, feature_maps, dtype=jnp.float32):
    """Deterministic init mimicking nn.Linear's kaiming-uniform bound 1/sqrt(fan_in).
    Weights returned already transposed to (in_features, out_features)."""
    k1, k2, k3 = jax.random.split(key, 3)
    d_in, d_h1, d_h2 = 20 * feature_maps, 5 * feature_maps, feature_maps

    def _w(k, fan_in, fan_out):
        bound = 1.0 / jnp.sqrt(fan_in)
        return jax.random.uniform(k, (fan_in, fan_out), dtype, -bound, bound)

    w1 = _w(k1, d_in, d_h1)   # (20F, 5F)
    w2 = _w(k2, d_h1, d_h2)   # (5F, F)
    w3 = _w(k3, d_h2, 1)      # (F, 1)
    return w1, w2, w3


def reference_forward(x, w1, w2, w3):
    h = _leaky_relu(x @ w1)
    h = _leaky_relu(h @ w2)
    return h @ w3


if __name__ == "__main__":
    feature_maps = 32          # dims: 640 -> 160 -> 32 -> 1
    batch = 200                # non-multiple of 128 -> exercises edge masking

    key = jax.random.PRNGKey(0)
    kx, kp = jax.random.split(key)
    x = jax.random.normal(kx, (batch, 20 * feature_maps), dtype=jnp.float32)
    w1, w2, w3 = init_params(kp, feature_maps)           # f32 masters
    w1b, w2b, w3b = prepare_params(w1, w2, w3)           # one-time bf16 cast

    ref = reference_forward(x, w1, w2, w3)

    # Default path: tb=128 (>=2 grid steps for B=200), last tile partial.
    out = jax.block_until_ready(discriminator_double3(x, w1b, w2b, w3b))
    assert out.shape == (batch, 1), out.shape
    assert jnp.allclose(out, ref, atol=3e-2, rtol=3e-2), "mismatch vs reference"

    # Explicit small-tile path (same semantics, exercises the block_b knob).
    out2 = jax.block_until_ready(
        discriminator_double3(x, w1b, w2b, w3b, block_b=128))
    assert out2.shape == (batch, 1), out2.shape
    assert jnp.allclose(out2, ref, atol=3e-2, rtol=3e-2), "mismatch (gridded) vs reference"

    print("KERNEL_OK")
</pallas_src>

<mosaic_0001>
module attributes {stable_mosaic.version = 11 : i64} {
  func.func @_disc_kernel(%arg0: i32, %arg1: memref<128x640xf32, #tpu.memory_space<vmem>>, %arg2: memref<640x160xbf16, #tpu.memory_space<vmem>>, %arg3: memref<160x32xbf16, #tpu.memory_space<vmem>>, %arg4: memref<32x1xbf16, #tpu.memory_space<vmem>>, %arg5: memref<128x1xf32, #tpu.memory_space<vmem>>) attributes {dimension_semantics = [#tpu.dimension_semantics<parallel>], iteration_bounds = array<i64: 2>, scalar_prefetch = 0 : i64, scratch_operands = 0 : i64, tpu.core_type = #tpu.core_type<tc>, window_params = [{transform_indices = @transform_0, window_bounds = array<i64: 128, 640>}, {pipeline_mode = #tpu.pipeline_mode<synchronous>, transform_indices = @transform_1, window_bounds = array<i64: 640, 160>}, {pipeline_mode = #tpu.pipeline_mode<synchronous>, transform_indices = @transform_2, window_bounds = array<i64: 160, 32>}, {pipeline_mode = #tpu.pipeline_mode<synchronous>, transform_indices = @transform_3, window_bounds = array<i64: 32, 1>}, {transform_indices = @transform_4, window_bounds = array<i64: 128, 1>}]} {
    %c0 = arith.constant 0 : index
    %c0_0 = arith.constant 0 : index
    %0 = vector.load %arg1[%c0, %c0_0] : memref<128x640xf32, #tpu.memory_space<vmem>>, vector<128x640xf32>
    %1 = arith.truncf %0 : vector<128x640xf32> to vector<128x640xbf16>
    %c0_1 = arith.constant 0 : index
    %c0_2 = arith.constant 0 : index
    %2 = vector.load %arg2[%c0_1, %c0_2] : memref<640x160xbf16, #tpu.memory_space<vmem>>, vector<640x160xbf16>
    %cst = arith.constant dense<0.000000e+00> : vector<128x160xf32>
    %3 = tpu.matmul %1, %2, %cst {dimension_numbers = #tpu.dot_dimension_numbers<[1], [0], [0], [1], [0, 0, 1, 1], [], []>} : vector<128x640xbf16>, vector<640x160xbf16>, vector<128x160xf32> -> vector<128x160xf32>
    %cst_3 = arith.constant 0.000000e+00 : f32
    %4 = vector.broadcast %cst_3 : f32 to vector<128x160xf32>
    %5 = arith.cmpf ogt, %3, %4 : vector<128x160xf32>
    %cst_4 = arith.constant 1.000000e-01 : f32
    %6 = vector.broadcast %cst_4 : f32 to vector<128x160xf32>
    %7 = arith.mulf %6, %3 : vector<128x160xf32>
    %8 = arith.select %5, %3, %7 : vector<128x160xi1>, vector<128x160xf32>
    %9 = arith.truncf %8 : vector<128x160xf32> to vector<128x160xbf16>
    %c0_5 = arith.constant 0 : index
    %c0_6 = arith.constant 0 : index
    %10 = vector.load %arg3[%c0_5, %c0_6] : memref<160x32xbf16, #tpu.memory_space<vmem>>, vector<160x32xbf16>
    %cst_7 = arith.constant dense<0.000000e+00> : vector<128x32xf32>
    %11 = tpu.matmul %9, %10, %cst_7 {dimension_numbers = #tpu.dot_dimension_numbers<[1], [0], [0], [1], [0, 0, 1, 1], [], []>} : vector<128x160xbf16>, vector<160x32xbf16>, vector<128x32xf32> -> vector<128x32xf32>
    %cst_8 = arith.constant 0.000000e+00 : f32
    %12 = vector.broadcast %cst_8 : f32 to vector<128x32xf32>
    %13 = arith.cmpf ogt, %11, %12 : vector<128x32xf32>
    %cst_9 = arith.constant 1.000000e-01 : f32
    %14 = vector.broadcast %cst_9 : f32 to vector<128x32xf32>
    %15 = arith.mulf %14, %11 : vector<128x32xf32>
    %16 = arith.select %13, %11, %15 : vector<128x32xi1>, vector<128x32xf32>
    %17 = arith.truncf %16 : vector<128x32xf32> to vector<128x32xbf16>
    %c0_10 = arith.constant 0 : index
    %c0_11 = arith.constant 0 : index
    %18 = vector.load %arg4[%c0_10, %c0_11] : memref<32x1xbf16, #tpu.memory_space<vmem>>, vector<32x1xbf16>
    %cst_12 = arith.constant dense<0.000000e+00> : vector<128x1xf32>
    %19 = tpu.matmul %17, %18, %cst_12 {dimension_numbers = #tpu.dot_dimension_numbers<[1], [0], [0], [1], [0, 0, 1, 1], [], []>} : vector<128x32xbf16>, vector<32x1xbf16>, vector<128x1xf32> -> vector<128x1xf32>
    %c0_13 = arith.constant 0 : index
    %c0_14 = arith.constant 0 : index
    %20 = vector.load %arg5[%c0_13, %c0_14] : memref<128x1xf32, #tpu.memory_space<vmem>>, vector<128x1xf32>
    tpu.vector_store %arg5[%c0_13, %c0_14], %19 {strides = array<i32>} : memref<128x1xf32, #tpu.memory_space<vmem>>, vector<128x1xf32>,
    return
  }
  func.func @transform_0(%arg0: i32) -> (i32, i32) {
    %c0_i32 = arith.constant 0 : i32
    %c0_i32_0 = arith.constant 0 : i32
    return %arg0, %c0_i32 : i32, i32
  }
  func.func @transform_1(%arg0: i32) -> (i32, i32) {
    %c0_i32 = arith.constant 0 : i32
    %c0_i32_0 = arith.constant 0 : i32
    %c0_i32_1 = arith.constant 0 : i32
    return %c0_i32, %c0_i32_0 : i32, i32
  }
  func.func @transform_2(%arg0: i32) -> (i32, i32) {
    %c0_i32 = arith.constant 0 : i32
    %c0_i32_0 = arith.constant 0 : i32
    %c0_i32_1 = arith.constant 0 : i32
    return %c0_i32, %c0_i32_0 : i32, i32
  }
  func.func @transform_3(%arg0: i32) -> (i32, i32) {
    %c0_i32 = arith.constant 0 : i32
    %c0_i32_0 = arith.constant 0 : i32
    %c0_i32_1 = arith.constant 0 : i32
    return %c0_i32, %c0_i32_0 : i32, i32
  }
  func.func @transform_4(%arg0: i32) -> (i32, i32) {
    %c0_i32 = arith.constant 0 : i32
    %c0_i32_0 = arith.constant 0 : i32
    return %arg0, %c0_i32 : i32, i32
  }
}

</mosaic_0001>

<bundles_post_ra>
// kernel: tpu_custom_call.1
= control target key start
LH: loop header
LB: loop body
LE: loop exit
PB: predicated region body
PF: predicated region fallthrough
CT: control target
= control target key end

     0   :  { %s2800_s15 = smov 0   ;;  %s2802_s16 = smov 0   ;;  %s3891_s0 = inlined_call_operand.vmem [shape: f32[200,640], index: 0, kind: input, shape index: {}]   ;;  %s3892_s1 = inlined_call_operand.vmem [shape: bf16[640,160], index: 1, kind: input, shape index: {}]   ;;  %s3893_s2 = inlined_call_operand.vmem [shape: bf16[160,32], index: 2, kind: input, shape index: {}]   ;;  %s3894_s3 = inlined_call_operand.vmem [shape: bf16[32,1], index: 3, kind: input, shape index: {}]   ;;  %s3895_s4 = inlined_call_operand.vmem [shape: f32[200,1], index: 4, kind: output, shape index: {}]  }
   0x1   :  { %s2804_s17 = smov 0  }
   0x2 LB: > { %s2813_s18 = sadd.s32 4294967295, %s2741_s17   ;;  %s2815_s19 = sadd.s32 1, %s2741_s17   ;;  %s2741_s17 = sphi %s2804_s17, %s3930_s17   ;;  %s2737_s16 = sphi %s2802_s16, %s3929_s16   ;;  %s2733_s15 = sphi %s2800_s15, %s3928_s15  }
   0x3   : > { %s107_s20 = ssub.s32 %s2741_s17, %s2815_s19  ;;  %s110_s21 = sadd.s32 1, %s2737_s16 }
   0x4   : > { %p108_p0 = scmp.eq.s32.totalorder %s107_s20, 0  ;;  %p120_p1 = scmp.ne.s32.totalorder %s2737_s16, %s2733_s15 }
   0x5   : > { %p121_p2 = scmp.eq.s32.totalorder %s2813_s18, 1  ;;  %p2074_p3 = scmp.ge.s32.totalorder %s2741_s17, 1 }
   0x6   : > { %s2823_s22 = scalar_select %p108_p0, %s2737_s16, %s110_s21  }
   0x7   : > { %p2825_p4 = por %p121_p2, %p120_p1  ;;  %p174_p5 = scmp.lt.s32.totalorder %s2741_s17, 3 }
   0x9   : > { %p175_p6 = pnand %p2074_p3, %p174_p5 }
   0xb   : > { %178 = sbr.rel (%p175_p6) target bundleno = 921 (0x399), region = 36 }
  0x10   : > { %v2136_v0 = vld [vmem:[%s3892_s1 + $0x70] sm:$0xf]  ;;  %v2494_v1 = vld [vmem:[%s3892_s1 + $0x74] sm:$0xf0]  ;;  %v2128_v2 = vld [vmem:[%s3892_s1 + $0x60] sm:$0xf] }
  0x11   : > { %v2137_v3 = vor.u32 %v2494_v1, %v2136_v0  ;;  %v2492_v4 = vld [vmem:[%s3892_s1 + $0x64] sm:$0xf0]  ;;  %v2120_v6 = vld [vmem:[%s3892_s1 + $0x50] sm:$0xf]  ;;  %v2490_v7 = vld [vmem:[%s3892_s1 + $0x54] sm:$0xf0] }
  0x12   : > { %v2129_v5 = vor.u32 %v2492_v4, %v2128_v2  ;;  %v2121_v8 = vor.u32 %v2490_v7, %v2120_v6  ;;  %v2112_v9 = vld [vmem:[%s3892_s1 + $0x40] sm:$0xf]  ;;  %v2488_v10 = vld [vmem:[%s3892_s1 + $0x44] sm:$0xf0]  ;;  %s2854_s14 = sshll.u32 %s2813_s18, 4  ;;  %s202_s26 = sand.u32 1, %s2733_s15  }
  0x13   : > { %2574 = vmatpush.bf16.msra.mxu1 %v2137_v3  ;;  %2575 = vmatpush.bf16.msra.mxu2 %v2137_v3  ;;  %v2113_v11 = vor.u32 %v2488_v10, %v2112_v9  ;;  %p211_p7 = scmp.lt.s32.totalorder %s2854_s14, 24  ;;  %v2104_v12 = vld [vmem:[%s3892_s1 + $0x30] sm:$0xf]  ;;  %v2486_v13 = vld [vmem:[%s3892_s1 + $0x34] sm:$0xf0]  ;;  %s2075_s27 = sshll.u32 %s202_s26, 7 }
  0x14   : > { %2576 = vmatpush.bf16.msra.mxu3 %v2137_v3  ;;  %828 = vmatpush.bf16.msra.mxu0 %v2137_v3  ;;  %v2105_v14 = vor.u32 %v2486_v13, %v2104_v12  ;;  %v2096_v15 = vld [vmem:[%s3892_s1 + $0x20] sm:$0xf]  ;;  %v2484_v16 = vld [vmem:[%s3892_s1 + $0x24] sm:$0xf0]  ;;  %v2088_v18 = vld [vmem:[%s3892_s1 + $0x10] sm:$0xf] }
  0x15   : > { %s212_s25 = scalar_select %p211_p7, %s2854_s14, 24  ;;  %v2097_v17 = vor.u32 %v2484_v16, %v2096_v15  ;;  %v2482_v19 = vld [vmem:[%s3892_s1 + $0x14] sm:$0xf0]  ;;  %v2080_v21 = vld [vmem:[%s3892_s1] sm:$0xf] }
  0x16   : > { %v2089_v20 = vor.u32 %v2482_v19, %v2088_v18  ;;  %v2480_v22 = vld [vmem:[%s3892_s1 + $0x4] sm:$0xf0]  ;;  %v2200_v23 = vld [vmem:[%s3892_s1 + $0xf0] sm:$0xf]  ;;  %v2510_v24 = vld [vmem:[%s3892_s1 + $0xf4] sm:$0xf0] }
  0x17   : > { %2577 = vmatpush.bf16.msra.mxu1 %v2129_v5  ;;  %2578 = vmatpush.bf16.msra.mxu2 %v2129_v5  ;;  %s2598_s30 = smul.u32 40, %s212_s25  ;;  %v2264_v25 = vld [vmem:[%s3892_s1 + $0x170] sm:$0xf]  ;;  %v2526_v26 = vld [vmem:[%s3892_s1 + $0x174] sm:$0xf0]  ;;  %v2081_v30 = vor.u32 %v2480_v22, %v2080_v21  ;;  %v2201_v35 = vor.u32 %v2510_v24, %v2200_v23  ;;  %s3753_s28 = scalar_lea.vmem [#allocation2], %s2075_s27  }
  0x18   : > { %2579 = vmatpush.bf16.msra.mxu3 %v2129_v5  ;;  %829 = vmatpush.bf16.msra.mxu0 %v2129_v5  ;;  %v2328_v28 = vld [vmem:[%s3892_s1 + $0x1f0] sm:$0xf]  ;;  %v2542_v29 = vld [vmem:[%s3892_s1 + $0x1f4] sm:$0xf0]  ;;  %v2192_v34 = vld [vmem:[%s3892_s1 + $0xe0] sm:$0xf]  ;;  %v2265_v39 = vor.u32 %v2526_v26, %v2264_v25 }
  0x19   : > { %s2879_s11 = scalar_lea.vmem %s3891_s0, %s2598_s30  ;;  %v2508_v38 = vld [vmem:[%s3892_s1 + $0xe4] sm:$0xf0]  ;;  %v2329_v40 = vor.u32 %v2542_v29, %v2328_v28  ;;  %v2256_v41 = vld [vmem:[%s3892_s1 + $0x160] sm:$0xf]  ;;  %v2392_v42 = vld [vmem:[%s3892_s1 + $0x270] sm:$0xf] }
  0x1a   : > { %v248_v27 = vld [vmem:[%s2879_s11 + $0xa0] sm:$0xff]  ;;  %v253_v31 = vld [vmem:[%s2879_s11 + $0xc8] sm:$0xff]  ;;  %v2558_v43 = vld [vmem:[%s3892_s1 + $0x274] sm:$0xf0]  ;;  %v2193_v52 = vor.u32 %v2508_v38, %v2192_v34  ;;  %s1803_s15 = ssub.s32 (%p2825_p4), 25, %s2854_s14  ;;  %s2571_s29 = sshll.u32 (%p2825_p4), %s2813_s18, 7 }
  0x1b   : > { %2580 = vmatpush.bf16.msra.mxu1 %v2121_v8  ;;  %2581 = vmatpush.bf16.msra.mxu2 %v2121_v8  ;;  %v268_v32 = vld [vmem:[%s2879_s11 + $0x140] sm:$0xff]  ;;  %v273_v33 = vld [vmem:[%s2879_s11 + $0x168] sm:$0xff]  ;;  %v2926_v44 = vpack.c.bf16 %v253_v31, %v248_v27  ;;  %v2184_v53 = vld [vmem:[%s3892_s1 + $0xd0] sm:$0xf]  ;;  %v2393_v55 = vor.u32 %v2558_v43, %v2392_v42  ;;  %p1804_p8 = scmp.lt.s32.totalorder (%p2825_p4), %s1803_s15, 16  ;;  %s3794_s6 = scalar_lea.vmem (%p2825_p4), %s3895_s4, %s2571_s29  }
  0x1c   : > { %2582 = vmatpush.bf16.msra.mxu3 %v2121_v8  ;;  %830 = vmatpush.bf16.msra.mxu0 %v2121_v8  ;;  %v288_v36 = vld [vmem:[%s2879_s11 + $0x1e0] sm:$0xff]  ;;  %v293_v37 = vld [vmem:[%s2879_s11 + $0x208] sm:$0xff]  ;;  %v2928_v45 = vpack.c.bf16 %v273_v33, %v268_v32  ;;  %v2506_v54 = vld [vmem:[%s3892_s1 + $0xd4] sm:$0xf0] }
  0x1d   : > { %v2524_v46 = vld [vmem:[%s3892_s1 + $0x164] sm:$0xf0]  ;;  %v2320_v47 = vld [vmem:[%s3892_s1 + $0x1e0] sm:$0xf]  ;;  %v2939_v49 = vpack.c.bf16 %v293_v37, %v288_v36  ;;  %v2248_v58 = vld [vmem:[%s3892_s1 + $0x150] sm:$0xf]  ;;  %v2185_v1 = vor.u32 %v2506_v54, %v2184_v53 }
  0x1e   : > { %v2540_v48 = vld [vmem:[%s3892_s1 + $0x1e4] sm:$0xf0]  ;;  %v228_v50 = vld [vmem:[%s2879_s11] sm:$0xff]  ;;  %v2257_v56 = vor.u32 %v2524_v46, %v2256_v41  ;;  %v2522_v61 = vld [vmem:[%s3892_s1 + $0x154] sm:$0xf0] }
  0x1f   : > { %2583 = vmatpush.bf16.msra.mxu1 %v2113_v11  ;;  %2584 = vmatpush.bf16.msra.mxu2 %v2113_v11  ;;  %v233_v51 = vld [vmem:[%s2879_s11 + $0x28] sm:$0xff]  ;;  %v2321_v57 = vor.u32 %v2540_v48, %v2320_v47  ;;  %v2384_v59 = vld [vmem:[%s3892_s1 + $0x260] sm:$0xf]  ;;  %v2312_v63 = vld [vmem:[%s3892_s1 + $0x1d0] sm:$0xf]  ;;  %v2249_v5 = vor.u32 %v2522_v61, %v2248_v58 }
  0x20   : > { %2585 = vmatpush.bf16.msra.mxu3 %v2113_v11  ;;  %831 = vmatpush.bf16.msra.mxu0 %v2113_v11  ;;  %v2556_v60 = vld [vmem:[%s3892_s1 + $0x264] sm:$0xf0]  ;;  %v2963_v62 = vpack.c.bf16 %v233_v51, %v228_v50  ;;  %v2538_v0 = vld [vmem:[%s3892_s1 + $0x1d4] sm:$0xf0]  ;;  %v2176_v2 = vld [vmem:[%s3892_s1 + $0xc0] sm:$0xf] }
  0x21   : > { %v2504_v3 = vld [vmem:[%s3892_s1 + $0xc4] sm:$0xf0]  ;;  %v2385_v4 = vor.u32 %v2556_v60, %v2384_v59  ;;  %v2313_v6 = vor.u32 %v2538_v0, %v2312_v63  ;;  %v2240_v7 = vld [vmem:[%s3892_s1 + $0x140] sm:$0xf]  ;;  %v2376_v8 = vld [vmem:[%s3892_s1 + $0x250] sm:$0xf] }
  0x22   : > { %v2554_v9 = vld [vmem:[%s3892_s1 + $0x254] sm:$0xf0]  ;;  %v2520_v10 = vld [vmem:[%s3892_s1 + $0x144] sm:$0xf0]  ;;  %v2304_v11 = vld [vmem:[%s3892_s1 + $0x1c0] sm:$0xf]  ;;  %v2177_v13 = vor.u32 %v2504_v3, %v2176_v2 }
  0x23   : > { %2586 = vmatpush.bf16.msra.mxu1 %v2105_v14  ;;  %2587 = vmatpush.bf16.msra.mxu2 %v2105_v14  ;;  %v2536_v12 = vld [vmem:[%s3892_s1 + $0x1c4] sm:$0xf0]  ;;  %v2502_v15 = vld [vmem:[%s3892_s1 + $0xb4] sm:$0xf0]  ;;  %v2377_v16 = vor.u32 %v2554_v9, %v2376_v8  ;;  %v258_v19 = vld [vmem:[%s2879_s11 + $0xf0] sm:$0xff] }
  0x24   : > { %2588 = vmatpush.bf16.msra.mxu3 %v2105_v14  ;;  %832 = vmatpush.bf16.msra.mxu0 %v2105_v14  ;;  %v2168_v14 = vld [vmem:[%s3892_s1 + $0xb0] sm:$0xf]  ;;  %v2305_v18 = vor.u32 %v2536_v12, %v2304_v11  ;;  %v2368_v22 = vld [vmem:[%s3892_s1 + $0x240] sm:$0xf]  ;;  %v2552_v23 = vld [vmem:[%s3892_s1 + $0x244] sm:$0xf0] }
  0x25   : > { %v2232_v21 = vld [vmem:[%s3892_s1 + $0x130] sm:$0xf]  ;;  %v2518_v24 = vld [vmem:[%s3892_s1 + $0x134] sm:$0xf0]  ;;  %v2160_v32 = vld [vmem:[%s3892_s1 + $0xa0] sm:$0xf]  ;;  %v2369_v34 = vor.u32 %v2552_v23, %v2368_v22 }
  0x26   : > { %v2296_v25 = vld [vmem:[%s3892_s1 + $0x1b0] sm:$0xf]  ;;  %v2534_v26 = vld [vmem:[%s3892_s1 + $0x1b4] sm:$0xf0]  ;;  %v2500_v33 = vld [vmem:[%s3892_s1 + $0xa4] sm:$0xf0] }
  0x27   : > { %2589 = vmatpush.bf16.msra.mxu1 %v2097_v17  ;;  %2590 = vmatpush.bf16.msra.mxu2 %v2097_v17  ;;  %v278_v27 = vld [vmem:[%s2879_s11 + $0x190] sm:$0xff]  ;;  %v283_v28 = vld [vmem:[%s2879_s11 + $0x1b8] sm:$0xff]  ;;  %v2297_v36 = vor.u32 %v2534_v26, %v2296_v25  ;;  %v2224_v37 = vld [vmem:[%s3892_s1 + $0x120] sm:$0xf]  ;;  %v2161_v51 = vor.u32 %v2500_v33, %v2160_v32 }
  0x28   : > { %2591 = vmatpush.bf16.msra.mxu3 %v2097_v17  ;;  %833 = vmatpush.bf16.msra.mxu0 %v2097_v17  ;;  %v2241_v17 = vor.u32 %v2520_v10, %v2240_v7  ;;  %v298_v29 = vld [vmem:[%s2879_s11 + $0x230] sm:$0xff]  ;;  %v303_v31 = vld [vmem:[%s2879_s11 + $0x258] sm:$0xff]  ;;  %v3044_v41 = vpack.c.bf16 %v283_v28, %v278_v27  ;;  %v2516_v42 = vld [vmem:[%s3892_s1 + $0x124] sm:$0xf0] }
  0x29   : > { %v2360_v38 = vld [vmem:[%s3892_s1 + $0x230] sm:$0xf]  ;;  %v2288_v43 = vld [vmem:[%s3892_s1 + $0x1a0] sm:$0xf]  ;;  %v2532_v46 = vld [vmem:[%s3892_s1 + $0x1a4] sm:$0xf0]  ;;  %v3055_v47 = vpack.c.bf16 %v303_v31, %v298_v29 }
  0x2a   : > { %v238_v48 = vld [vmem:[%s2879_s11 + $0x50] sm:$0xff]  ;;  %v243_v50 = vld [vmem:[%s2879_s11 + $0x78] sm:$0xff]  ;;  %v2352_v58 = vld [vmem:[%s3892_s1 + $0x220] sm:$0xf] }
  0x2b   : > { %2592 = vmatpush.bf16.msra.mxu1 %v2089_v20  ;;  %2593 = vmatpush.bf16.msra.mxu2 %v2089_v20  ;;  %v2498_v53 = vld [vmem:[%s3892_s1 + $0x94] sm:$0xf0]  ;;  %v2548_v59 = vld [vmem:[%s3892_s1 + $0x224] sm:$0xf0]  ;;  %v3079_v61 = vpack.c.bf16 %v243_v50, %v238_v48  ;;  %v2280_v63 = vld [vmem:[%s3892_s1 + $0x190] sm:$0xf] }
  0x2c   : > { %2594 = vmatpush.bf16.msra.mxu3 %v2089_v20  ;;  %834 = vmatpush.bf16.msra.mxu0 %v2089_v20  ;;  %v263_v20 = vld [vmem:[%s2879_s11 + $0x118] sm:$0xff]  ;;  %v2144_v2 = vld [vmem:[%s3892_s1 + $0x80] sm:$0xf]  ;;  %v2496_v3 = vld [vmem:[%s3892_s1 + $0x84] sm:$0xf0] }
  0x2d   : > { %v2514_v60 = vld [vmem:[%s3892_s1 + $0x114] sm:$0xf0]  ;;  %v2208_v7 = vld [vmem:[%s3892_s1 + $0x100] sm:$0xf]  ;;  %v2344_v8 = vld [vmem:[%s3892_s1 + $0x210] sm:$0xf] }
  0x2e   : > { %v2530_v0 = vld [vmem:[%s3892_s1 + $0x194] sm:$0xf0]  ;;  %v2512_v10 = vld [vmem:[%s3892_s1 + $0x104] sm:$0xf0]  ;;  %v2272_v11 = vld [vmem:[%s3892_s1 + $0x180] sm:$0xf] }
  0x2f   : > { %2595 = vmatpush.bf16.msra.mxu1 %v2081_v30  ;;  %2596 = vmatpush.bf16.msra.mxu2 %v2081_v30  ;;  %v2546_v9 = vld [vmem:[%s3892_s1 + $0x214] sm:$0xf0]  ;;  %v2528_v12 = vld [vmem:[%s3892_s1 + $0x184] sm:$0xf0]  ;;  %v234_v22 = vld [vmem:[%s2879_s11 + $0x30] sm:$0xff] }
  0x30   : > { %2597 = vmatpush.bf16.msra.mxu3 %v2081_v30  ;;  %835 = vmatpush.bf16.msra.mxu0 %v2081_v30  ;;  %v2169_v30 = vor.u32 %v2502_v15, %v2168_v14  ;;  %v2138_v14 = vld [vmem:[%s3892_s1 + $0x78] sm:$0xf0]  ;;  %v2145_v15 = vor.u32 %v2496_v3, %v2144_v2  ;;  %v236_v27 = vld [vmem:[%s2879_s11 + $0x40] sm:$0xff]  ;;  %v245_v50 = vld [vmem:[%s2879_s11 + $0x88] sm:$0xff] }
  0x31   : > { %v235_v25 = vld [vmem:[%s2879_s11 + $0x38] sm:$0xff]  ;;  %v2491_v29 = vld [vmem:[%s3892_s1 + $0x64] sm:$0xf]  ;;  %v250_v2 = vld [vmem:[%s2879_s11 + $0xb0] sm:$0xff] }
  0x32   : > { %846 = vmatmul.bf16.vlgmr.msra.gmra.mxu1 %v2926_v44  ;;  %856 = vmatmul.bf16.vlgmr.msra.gmra.mxu2 %v2928_v45  ;;  %v231_v26 = vld [vmem:[%s2879_s11 + $0x18] sm:$0xff]  ;;  %v240_v48 = vld [vmem:[%s2879_s11 + $0x60] sm:$0xff] }
  0x33   : > { %877 = vmatpush.bf16.msrb.mxu1 %v2201_v35  ;;  %926 = vmatpush.bf16.msrb.mxu2 %v2265_v39  ;;  %v2233_v35 = vor.u32 %v2518_v24, %v2232_v21  ;;  %v2550_v39 = vld [vmem:[%s3892_s1 + $0x234] sm:$0xf0]  ;;  %v229_v21 = vld [vmem:[%s2879_s11 + $0x8] sm:$0xff]  ;;  %v230_v24 = vld [vmem:[%s2879_s11 + $0x10] sm:$0xff]  ;;  %v3141_v33 = vpack.c.bf16 %v236_v27, %v231_v26 }
  0x34   : > { %975 = vmatpush.bf16.msrb.mxu3 %v2329_v40  ;;  %1024 = vmatpush.bf16.msrb.mxu0 %v2393_v55  ;;  %v3042_v40 = vpack.c.bf16 %v263_v20, %v258_v19  ;;  %v2361_v54 = vor.u32 %v2550_v39, %v2360_v38  ;;  %v2225_v55 = vor.u32 %v2516_v42, %v2224_v37  ;;  %v2336_v19 = vld [vmem:[%s3892_s1 + $0x200] sm:$0xf]  ;;  %v2544_v20 = vld [vmem:[%s3892_s1 + $0x204] sm:$0xf0]  ;;  %v2489_v38 = vld [vmem:[%s3892_s1 + $0x54] sm:$0xf] }
  0x35   : > { %866 = vmatmul.bf16.vlgmr.msra.gmra.mxu3 %v2939_v49  ;;  %836 = vmatmul.bf16.vlgmr.msra.gmra.mxu0 %v2963_v62  ;;  %v2337_v28 = vor.u32 %v2544_v20, %v2336_v19  ;;  %v3137_v31 = vpack.c.bf16 %v234_v22, %v229_v21  ;;  %v3139_v32 = vpack.c.bf16 %v235_v25, %v230_v24  ;;  %v2122_v39 = vld [vmem:[%s3892_s1 + $0x58] sm:$0xf0]  ;;  %v261_v19 = vld [vmem:[%s2879_s11 + $0x108] sm:$0xff]  ;;  %v266_v20 = vld [vmem:[%s2879_s11 + $0x130] sm:$0xff] }
  0x36   : > { %v2125_v42 = vor.u32 %v2489_v38, %v2122_v39  ;;  %v255_v3 = vld [vmem:[%s2879_s11 + $0xd8] sm:$0xff]  ;;  %v262_v24 = vld [vmem:[%s2879_s11 + $0x110] sm:$0xff]  ;;  %v2483_v27 = vld [vmem:[%s3892_s1 + $0x24] sm:$0xf] }
  0x37   : > { %878 = vmatpush.bf16.msrb.mxu1 %v2193_v52  ;;  %927 = vmatpush.bf16.msrb.mxu2 %v2257_v56  ;;  %v2152_v52 = vld [vmem:[%s3892_s1 + $0x90] sm:$0xf]  ;;  %v2289_v56 = vor.u32 %v2532_v46, %v2288_v43  ;;  %v239_v43 = vld [vmem:[%s2879_s11 + $0x58] sm:$0xff]  ;;  %v244_v46 = vld [vmem:[%s2879_s11 + $0x80] sm:$0xff] }
  0x38   : > { %976 = vmatpush.bf16.msrb.mxu3 %v2321_v57  ;;  %1025 = vmatpush.bf16.msrb.mxu0 %v2385_v4  ;;  %v2216_v57 = vld [vmem:[%s3892_s1 + $0x110] sm:$0xf]  ;;  %v2353_v4 = vor.u32 %v2548_v59, %v2352_v58  ;;  %v2487_v59 = vld [vmem:[%s3892_s1 + $0x44] sm:$0xf]  ;;  %v267_v25 = vld [vmem:[%s2879_s11 + $0x138] sm:$0xff] }
  0x39   : > { %v3225_v26 = vpack.c.bf16 %v267_v25, %v262_v24  ;;  %v271_v38 = vld [vmem:[%s2879_s11 + $0x158] sm:$0xff]  ;;  %v276_v39 = vld [vmem:[%s2879_s11 + $0x180] sm:$0xff]  ;;  %v2541_v24 = vld [vmem:[%s3892_s1 + $0x1f4] sm:$0xf] }
  0x3a   : > { %v285_v25 = vld [vmem:[%s2879_s11 + $0x1c8] sm:$0xff] }
  0x3b   : > { %879 = vmatpush.bf16.msrb.mxu1 %v2185_v1  ;;  %928 = vmatpush.bf16.msrb.mxu2 %v2249_v5  ;;  %v2153_v1 = vor.u32 %v2498_v53, %v2152_v52  ;;  %v2217_v5 = vor.u32 %v2514_v60, %v2216_v57  ;;  %v246_v52 = vld [vmem:[%s2879_s11 + $0x90] sm:$0xff]  ;;  %v3163_v53 = vpack.c.bf16 %v244_v46, %v239_v43  ;;  %v247_v57 = vld [vmem:[%s2879_s11 + $0x98] sm:$0xff]  ;;  %v2114_v60 = vld [vmem:[%s3892_s1 + $0x48] sm:$0xf0] }
  0x3c   : > { %977 = vmatpush.bf16.msrb.mxu3 %v2313_v6  ;;  %1026 = vmatpush.bf16.msrb.mxu0 %v2377_v16  ;;  %v2281_v6 = vor.u32 %v2530_v0, %v2280_v63  ;;  %v2345_v16 = vor.u32 %v2546_v9, %v2344_v8  ;;  %v2117_v63 = vor.u32 %v2487_v59, %v2114_v60  ;;  %v249_v0 = vld [vmem:[%s2879_s11 + $0xa8] sm:$0xff]  ;;  %v252_v9 = vld [vmem:[%s2879_s11 + $0xc0] sm:$0xff]  ;;  %v2481_v59 = vld [vmem:[%s3892_s1 + $0x14] sm:$0xf] }
  0x3d   : > { %3908 = vst [vmem:[#allocation6_spill] sm:$0xff] %v3225_v26  ;;  %v3245_v46 = vpack.c.bf16 %v276_v39, %v271_v38  ;;  %v2090_v60 = vld [vmem:[%s3892_s1 + $0x18] sm:$0xf0] }
  0x3f   : > { %880 = vmatpush.bf16.msrb.mxu1 %v2177_v13  ;;  %929 = vmatpush.bf16.msrb.mxu2 %v2241_v17  ;;  %v2493_v13 = vld [vmem:[%s3892_s1 + $0x74] sm:$0xf]  ;;  %v2209_v17 = vor.u32 %v2512_v10, %v2208_v7  ;;  %v3191_v7 = vpack.c.bf16 %v255_v3, %v250_v2  ;;  %v257_v10 = vld [vmem:[%s2879_s11 + $0xe8] sm:$0xff]  ;;  %v2507_v3 = vld [vmem:[%s3892_s1 + $0xe4] sm:$0xf] }
  0x40   : > { %978 = vmatpush.bf16.msrb.mxu3 %v2305_v18  ;;  %1027 = vmatpush.bf16.msrb.mxu0 %v2369_v34  ;;  %v2273_v18 = vor.u32 %v2528_v12, %v2272_v11  ;;  %v2141_v23 = vor.u32 %v2493_v13, %v2138_v14  ;;  %v232_v34 = vld [vmem:[%s2879_s11 + $0x20] sm:$0xff]  ;;  %v3199_v11 = vpack.c.bf16 %v257_v10, %v252_v9  ;;  %v2485_v12 = vld [vmem:[%s3892_s1 + $0x34] sm:$0xf]  ;;  %v2106_v13 = vld [vmem:[%s3892_s1 + $0x38] sm:$0xf0] }
  0x41   : > { %v2109_v14 = vor.u32 %v2485_v12, %v2106_v13  ;;  %v2523_v9 = vld [vmem:[%s3892_s1 + $0x164] sm:$0xf]  ;;  %v2258_v10 = vld [vmem:[%s3892_s1 + $0x168] sm:$0xf0]  ;;  %v2505_v13 = vld [vmem:[%s3892_s1 + $0xd4] sm:$0xf] }
  0x42   : > { %851 = vmatmul.bf16.gmra.mxu1 %v3042_v40  ;;  %861 = vmatmul.bf16.gmra.mxu2 %v3044_v41  ;;  %3907 = vst [vmem:[#allocation5_spill] sm:$0xff] %v3199_v11  ;;  %v2261_v12 = vor.u32 %v2523_v9, %v2258_v10  ;;  %v2082_v9 = vld [vmem:[%s3892_s1 + $0x8] sm:$0xf0] }
  0x43   : > { %881 = vmatpush.bf16.msrb.mxu1 %v2169_v30  ;;  %930 = vmatpush.bf16.msrb.mxu2 %v2233_v35  ;;  %v2130_v30 = vld [vmem:[%s3892_s1 + $0x68] sm:$0xf0] }
  0x44   : > { %979 = vmatpush.bf16.msrb.mxu3 %v2297_v36  ;;  %1028 = vmatpush.bf16.msrb.mxu0 %v2361_v54  ;;  %v237_v35 = vld [vmem:[%s2879_s11 + $0x48] sm:$0xff]  ;;  %v2133_v36 = vor.u32 %v2491_v29, %v2130_v30  ;;  %v3165_v54 = vpack.c.bf16 %v245_v50, %v240_v48  ;;  %v272_v48 = vld [vmem:[%s2879_s11 + $0x160] sm:$0xff] }
  0x45   : > { %871 = vmatmul.bf16.gmra.mxu3 %v3055_v47  ;;  %841 = vmatmul.bf16.gmra.mxu0 %v3079_v61  ;;  %v3147_v37 = vpack.c.bf16 %v237_v35, %v232_v34  ;;  %v269_v30 = vld [vmem:[%s2879_s11 + $0x148] sm:$0xff]  ;;  %v274_v34 = vld [vmem:[%s2879_s11 + $0x170] sm:$0xff] }
  0x46   : > { %v270_v35 = vld [vmem:[%s2879_s11 + $0x150] sm:$0xff]  ;;  %v277_v50 = vld [vmem:[%s2879_s11 + $0x188] sm:$0xff] }
  0x47   : > { %882 = vmatpush.bf16.msrb.mxu1 %v2161_v51  ;;  %931 = vmatpush.bf16.msrb.mxu2 %v2225_v55  ;;  %3905 = vst [vmem:[#allocation3_spill] sm:$0xff] %v3147_v37  ;;  %v241_v51 = vld [vmem:[%s2879_s11 + $0x68] sm:$0xff] }
  0x48   : > { %980 = vmatpush.bf16.msrb.mxu3 %v2289_v56  ;;  %1029 = vmatpush.bf16.msrb.mxu0 %v2353_v4  ;;  %v3167_v55 = vpack.c.bf16 %v246_v52, %v241_v51  ;;  %v242_v56 = vld [vmem:[%s2879_s11 + $0x70] sm:$0xff]  ;;  %v251_v4 = vld [vmem:[%s2879_s11 + $0xb8] sm:$0xff] }
  0x49   : > { %v3173_v58 = vpack.c.bf16 %v247_v57, %v242_v56  ;;  %v2509_v51 = vld [vmem:[%s3892_s1 + $0xf4] sm:$0xf]  ;;  %v2202_v52 = vld [vmem:[%s3892_s1 + $0xf8] sm:$0xf0]  ;;  %v3257_v57 = vpack.c.bf16 %v277_v50, %v272_v48  ;;  %v2519_v50 = vld [vmem:[%s3892_s1 + $0x144] sm:$0xf] }
  0x4a   : > { %v2205_v56 = vor.u32 %v2509_v51, %v2202_v52  ;;  %v2242_v51 = vld [vmem:[%s3892_s1 + $0x148] sm:$0xf0]  ;;  %v2539_v52 = vld [vmem:[%s3892_s1 + $0x1e4] sm:$0xf] }
  0x4b   : > { %883 = vmatpush.bf16.msrb.mxu1 %v2153_v1  ;;  %932 = vmatpush.bf16.msrb.mxu2 %v2217_v5  ;;  %3906 = vst [vmem:[#allocation4_spill] sm:$0xff] %v3173_v58  ;;  %v254_v1 = vld [vmem:[%s2879_s11 + $0xd0] sm:$0xff]  ;;  %v256_v5 = vld [vmem:[%s2879_s11 + $0xe0] sm:$0xff] }
  0x4c   : > { %981 = vmatpush.bf16.msrb.mxu3 %v2281_v6  ;;  %1030 = vmatpush.bf16.msrb.mxu0 %v2345_v16  ;;  %v3189_v6 = vpack.c.bf16 %v254_v1, %v249_v0  ;;  %v3193_v8 = vpack.c.bf16 %v256_v5, %v251_v4  ;;  %v264_v16 = vld [vmem:[%s2879_s11 + $0x120] sm:$0xff]  ;;  %3909 = vst [vmem:[#allocation7_spill] sm:$0xff] %v3257_v57  ;;  %v2266_v1 = vld [vmem:[%s3892_s1 + $0x178] sm:$0xf0]  ;;  %v2194_v4 = vld [vmem:[%s3892_s1 + $0xe8] sm:$0xf0] }
  0x4d   : > { %v2093_v0 = vor.u32 %v2481_v59, %v2090_v60  ;;  %v2197_v5 = vor.u32 %v2507_v3, %v2194_v4  ;;  %v282_v59 = vld [vmem:[%s2879_s11 + $0x1b0] sm:$0xff]  ;;  %v287_v60 = vld [vmem:[%s2879_s11 + $0x1d8] sm:$0xff] }
  0x4e   : > { %v2170_v3 = vld [vmem:[%s3892_s1 + $0xb8] sm:$0xf0]  ;;  %v3343_v4 = vpack.c.bf16 %v287_v60, %v282_v59  ;;  %v2513_v59 = vld [vmem:[%s3892_s1 + $0x114] sm:$0xf] }
  0x4f   : > { %884 = vmatpush.bf16.msrb.mxu1 %v2145_v15  ;;  %933 = vmatpush.bf16.msrb.mxu2 %v2209_v17  ;;  %v259_v15 = vld [vmem:[%s2879_s11 + $0xf8] sm:$0xff]  ;;  %v260_v17 = vld [vmem:[%s2879_s11 + $0x100] sm:$0xff] }
  0x50   : > { %982 = vmatpush.bf16.msrb.mxu3 %v2273_v18  ;;  %1031 = vmatpush.bf16.msrb.mxu0 %v2337_v28  ;;  %v265_v18 = vld [vmem:[%s2879_s11 + $0x128] sm:$0xff]  ;;  %v3215_v21 = vpack.c.bf16 %v264_v16, %v259_v15  ;;  %v279_v16 = vld [vmem:[%s2879_s11 + $0x198] sm:$0xff]  ;;  %3910 = vst [vmem:[#allocation8_spill] sm:$0xff] %v3343_v4 }
  0x51   : > { %v3217_v22 = vpack.c.bf16 %v265_v18, %v260_v17  ;;  %v2098_v28 = vld [vmem:[%s3892_s1 + $0x28] sm:$0xf0]  ;;  %v284_v17 = vld [vmem:[%s2879_s11 + $0x1c0] sm:$0xff]  ;;  %v2218_v60 = vld [vmem:[%s3892_s1 + $0x118] sm:$0xf0] }
  0x52   : > { %885 = vmatmul.bf16.vlgmr.msrb.gmra.mxu1 %v3137_v31  ;;  %934 = vmatmul.bf16.vlgmr.msrb.gmra.mxu2 %v3139_v32  ;;  %v2101_v29 = vor.u32 %v2483_v27, %v2098_v28  ;;  %v280_v18 = vld [vmem:[%s2879_s11 + $0x1a0] sm:$0xff]  ;;  %v281_v27 = vld [vmem:[%s2879_s11 + $0x1a8] sm:$0xff]  ;;  %v3315_v39 = vpack.c.bf16 %v284_v17, %v279_v16  ;;  %v2314_v16 = vld [vmem:[%s3892_s1 + $0x1d8] sm:$0xf0] }
  0x53   : > { %1073 = vmatpush.bf16.msra.mxu1 %v2141_v23  ;;  %v3219_v23 = vpack.c.bf16 %v266_v20, %v261_v19  ;;  %1122 = vmatpush.bf16.msra.mxu2 %v2205_v56  ;;  %v2521_v19 = vld [vmem:[%s3892_s1 + $0x154] sm:$0xf]  ;;  %v2250_v20 = vld [vmem:[%s3892_s1 + $0x158] sm:$0xf0]  ;;  %v3317_v48 = vpack.c.bf16 %v285_v25, %v280_v18  ;;  %v2515_v25 = vld [vmem:[%s3892_s1 + $0x124] sm:$0xf] }
  0x54   : > { %v2253_v28 = vor.u32 %v2521_v19, %v2250_v20  ;;  %v2499_v19 = vld [vmem:[%s3892_s1 + $0xa4] sm:$0xf]  ;;  %v2162_v20 = vld [vmem:[%s3892_s1 + $0xa8] sm:$0xf0] }
  0x55   : > { %983 = vmatmul.bf16.vlgmr.msrb.gmra.mxu3 %v3141_v33  ;;  %1032 = vmatmul.bf16.vlgmr.msrb.gmra.mxu0 %v3147_v37 }
  0x57   : > { %1074 = vmatpush.bf16.msra.mxu1 %v2133_v36  ;;  %v275_v36 = vld [vmem:[%s2879_s11 + $0x178] sm:$0xff]  ;;  %1123 = vmatpush.bf16.msra.mxu2 %v2197_v5  ;;  %v2479_v5 = vld [vmem:[%s3892_s1 + $0x4] sm:$0xf] }
  0x58   : > { %v3243_v43 = vpack.c.bf16 %v275_v36, %v270_v35  ;;  %v2503_v35 = vld [vmem:[%s3892_s1 + $0xc4] sm:$0xf]  ;;  %v2178_v36 = vld [vmem:[%s3892_s1 + $0xc8] sm:$0xf0] }
  0x59   : > { %v2181_v38 = vor.u32 %v2503_v35, %v2178_v36 }
  0x5b   : > { %1075 = vmatpush.bf16.msra.mxu1 %v2125_v42  ;;  %v3241_v42 = vpack.c.bf16 %v274_v34, %v269_v30  ;;  %v286_v30 = vld [vmem:[%s2879_s11 + $0x1d0] sm:$0xff] }
  0x5c   : > { %v3328_v56 = vpack.c.bf16 %v286_v30, %v281_v27  ;;  %v2226_v27 = vld [vmem:[%s3892_s1 + $0x128] sm:$0xf0]  ;;  %v2497_v30 = vld [vmem:[%s3892_s1 + $0x94] sm:$0xf] }
  0x5d   : > { %v2229_v35 = vor.u32 %v2515_v25, %v2226_v27  ;;  %v297_v25 = vld [vmem:[%s2879_s11 + $0x228] sm:$0xff] }
  0x5e   : > { %v2290_v27 = vld [vmem:[%s3892_s1 + $0x1a8] sm:$0xf0] }
  0x5f   : > { %1076 = vmatpush.bf16.msra.mxu1 %v2117_v63  ;;  %v2525_v63 = vld [vmem:[%s3892_s1 + $0x174] sm:$0xf] }
  0x60   : > { %v2269_v2 = vor.u32 %v2525_v63, %v2266_v1  ;;  %v2322_v63 = vld [vmem:[%s3892_s1 + $0x1e8] sm:$0xf0] }
  0x61   : > { %v2325_v1 = vor.u32 %v2539_v52, %v2322_v63  ;;  %v290_v52 = vld [vmem:[%s2879_s11 + $0x1f0] sm:$0xff] }
  0x62   : > { %890 = vmatmul.bf16.gmra.mxu1 %v3163_v53  ;;  %939 = vmatmul.bf16.gmra.mxu2 %v3165_v54  ;;  %v2533_v63 = vld [vmem:[%s3892_s1 + $0x1b4] sm:$0xf] }
  0x63   : > { %1077 = vmatpush.bf16.msra.mxu1 %v2109_v14  ;;  %1171 = vmatpush.bf16.msra.mxu3 %v2269_v2  ;;  %v2186_v14 = vld [vmem:[%s3892_s1 + $0xd8] sm:$0xf0]  ;;  %v2501_v2 = vld [vmem:[%s3892_s1 + $0xb4] sm:$0xf] }
  0x64   : > { %v2189_v15 = vor.u32 %v2505_v13, %v2186_v14  ;;  %v2173_v10 = vor.u32 %v2501_v2, %v2170_v3  ;;  %v2085_v13 = vor.u32 %v2479_v5, %v2082_v9  ;;  %v2234_v14 = vld [vmem:[%s3892_s1 + $0x138] sm:$0xf0]  ;;  %v296_v3 = vld [vmem:[%s2879_s11 + $0x220] sm:$0xff]  ;;  %v2221_v5 = vor.u32 %v2513_v59, %v2218_v60 }
  0x65   : > { %988 = vmatmul.bf16.gmra.mxu3 %v3167_v55  ;;  %1037 = vmatmul.bf16.gmra.mxu0 %v3173_v58  ;;  %v2298_v2 = vld [vmem:[%s3892_s1 + $0x1b8] sm:$0xf0] }
  0x66   : > { %1124 = vmatpush.bf16.msra.mxu2 %v2189_v15  ;;  %v2537_v15 = vld [vmem:[%s3892_s1 + $0x1d4] sm:$0xf]  ;;  %v2301_v9 = vor.u32 %v2533_v63, %v2298_v2  ;;  %v2527_v63 = vld [vmem:[%s3892_s1 + $0x184] sm:$0xf] }
  0x67   : > { %1078 = vmatpush.bf16.msra.mxu1 %v2101_v29  ;;  %1172 = vmatpush.bf16.msra.mxu3 %v2261_v12  ;;  %v2330_v29 = vld [vmem:[%s3892_s1 + $0x1f8] sm:$0xf0]  ;;  %v2517_v12 = vld [vmem:[%s3892_s1 + $0x134] sm:$0xf]  ;;  %v2317_v18 = vor.u32 %v2537_v15, %v2314_v16  ;;  %v2511_v16 = vld [vmem:[%s3892_s1 + $0x104] sm:$0xf] }
  0x68   : > { %v2333_v34 = vor.u32 %v2541_v24, %v2330_v29  ;;  %v2237_v17 = vor.u32 %v2517_v12, %v2234_v14  ;;  %v2165_v24 = vor.u32 %v2499_v19, %v2162_v20  ;;  %v2306_v29 = vld [vmem:[%s3892_s1 + $0x1c8] sm:$0xf0] }
  0x69   : > { %v2146_v12 = vld [vmem:[%s3892_s1 + $0x88] sm:$0xf0] }
  0x6a   : > { %1220 = vmatpush.bf16.msra.mxu0 %v2333_v34  ;;  %1125 = vmatpush.bf16.msra.mxu2 %v2181_v38  ;;  %v2154_v34 = vld [vmem:[%s3892_s1 + $0x98] sm:$0xf0] }
  0x6b   : > { %1079 = vmatpush.bf16.msra.mxu1 %v2093_v0  ;;  %1173 = vmatpush.bf16.msra.mxu3 %v2253_v28  ;;  %v2245_v0 = vor.u32 %v2519_v50, %v2242_v51  ;;  %v2535_v28 = vld [vmem:[%s3892_s1 + $0x1c4] sm:$0xf]  ;;  %v2157_v38 = vor.u32 %v2497_v30, %v2154_v34  ;;  %v289_v50 = vld [vmem:[%s2879_s11 + $0x1e8] sm:$0xff]  ;;  %v294_v51 = vld [vmem:[%s2879_s11 + $0x210] sm:$0xff] }
  0x6c   : > { %v2309_v36 = vor.u32 %v2535_v28, %v2306_v29  ;;  %v3413_v14 = vpack.c.bf16 %v294_v51, %v289_v50  ;;  %v2557_v34 = vld [vmem:[%s3892_s1 + $0x274] sm:$0xf]  ;;  %v2282_v51 = vld [vmem:[%s3892_s1 + $0x198] sm:$0xf0] }
  0x6e   : > { %1221 = vmatpush.bf16.msra.mxu0 %v2325_v1  ;;  %1126 = vmatpush.bf16.msra.mxu2 %v2173_v10  ;;  %v291_v1 = vld [vmem:[%s2879_s11 + $0x1f8] sm:$0xff]  ;;  %v2495_v10 = vld [vmem:[%s3892_s1 + $0x84] sm:$0xf] }
  0x6f   : > { %1174 = vmatpush.bf16.msra.mxu3 %v2245_v0  ;;  %1080 = vmatpush.bf16.msra.mxu1 %v2085_v13  ;;  %v295_v0 = vld [vmem:[%s2879_s11 + $0x218] sm:$0xff]  ;;  %v2149_v13 = vor.u32 %v2495_v10, %v2146_v12  ;;  %v3428_v20 = vpack.c.bf16 %v296_v3, %v291_v1  ;;  %v300_v10 = vld [vmem:[%s2879_s11 + $0x240] sm:$0xff]  ;;  %v305_v12 = vld [vmem:[%s2879_s11 + $0x268] sm:$0xff] }
  0x70   : > { %v3415_v15 = vpack.c.bf16 %v295_v0, %v290_v52  ;;  %v2274_v0 = vld [vmem:[%s3892_s1 + $0x188] sm:$0xf0]  ;;  %v299_v3 = vld [vmem:[%s2879_s11 + $0x238] sm:$0xff] }
  0x71   : > { %v2277_v2 = vor.u32 %v2527_v63, %v2274_v0  ;;  %v2555_v63 = vld [vmem:[%s3892_s1 + $0x264] sm:$0xf]  ;;  %v2386_v0 = vld [vmem:[%s3892_s1 + $0x268] sm:$0xf0] }
  0x72   : > { %895 = vmatmul.bf16.gmra.mxu1 %v3189_v6  ;;  %944 = vmatmul.bf16.gmra.mxu2 %v3191_v7 }
  0x73   : > { %1222 = vmatpush.bf16.msra.mxu0 %v2317_v18  ;;  %1175 = vmatpush.bf16.msra.mxu3 %v2237_v17  ;;  %v2210_v17 = vld [vmem:[%s3892_s1 + $0x108] sm:$0xf0]  ;;  %v2531_v18 = vld [vmem:[%s3892_s1 + $0x1a4] sm:$0xf] }
  0x74   : > { %1127 = vmatpush.bf16.msra.mxu2 %v2165_v24  ;;  %v292_v24 = vld [vmem:[%s2879_s11 + $0x200] sm:$0xff]  ;;  %v2213_v28 = vor.u32 %v2511_v16, %v2210_v17  ;;  %v2293_v29 = vor.u32 %v2531_v18, %v2290_v27  ;;  %v306_v16 = vld [vmem:[%s2879_s11 + $0x270] sm:$0xff] }
  0x75   : > { %993 = vmatmul.bf16.gmra.mxu3 %v3193_v8  ;;  %1042 = vmatmul.bf16.gmra.mxu0 %v3199_v11  ;;  %v3437_v30 = vpack.c.bf16 %v297_v25, %v292_v24  ;;  %v3477_v25 = vpack.c.bf16 %v305_v12, %v300_v10 }
  0x77   : > { %1223 = vmatpush.bf16.msra.mxu0 %v2309_v36  ;;  %1176 = vmatpush.bf16.msra.mxu3 %v2229_v35  ;;  %3911 = vst [vmem:[#allocation9_spill] sm:$0xff] %v3437_v30  ;;  %v2394_v35 = vld [vmem:[%s3892_s1 + $0x278] sm:$0xf0]  ;;  %v2529_v36 = vld [vmem:[%s3892_s1 + $0x194] sm:$0xf] }
  0x78   : > { %1128 = vmatpush.bf16.msra.mxu2 %v2157_v38  ;;  %v2397_v50 = vor.u32 %v2557_v34, %v2394_v35  ;;  %v2285_v52 = vor.u32 %v2529_v36, %v2282_v51  ;;  %v307_v34 = vld [vmem:[%s2879_s11 + $0x278] sm:$0xff] }
  0x7a   : > { %1269 = vmatpush.bf16.msrb.mxu1 %v2397_v50 }
  0x7b   : > { %1224 = vmatpush.bf16.msra.mxu0 %v2301_v9  ;;  %1177 = vmatpush.bf16.msra.mxu3 %v2221_v5  ;;  %v304_v9 = vld [vmem:[%s2879_s11 + $0x260] sm:$0xff] }
  0x7c   : > { %1129 = vmatpush.bf16.msra.mxu2 %v2149_v13  ;;  %v301_v13 = vld [vmem:[%s2879_s11 + $0x248] sm:$0xff]  ;;  %v3475_v24 = vpack.c.bf16 %v304_v9, %v299_v3 }
  0x7f   : > { %1225 = vmatpush.bf16.msra.mxu0 %v2293_v29  ;;  %1178 = vmatpush.bf16.msra.mxu3 %v2213_v28  ;;  %v3481_v28 = vpack.c.bf16 %v306_v16, %v301_v13  ;;  %v302_v29 = vld [vmem:[%s2879_s11 + $0x250] sm:$0xff] }
  0x80   : > { %v3487_v35 = vpack.c.bf16 %v307_v34, %v302_v29  ;;  %v2553_v29 = vld [vmem:[%s3892_s1 + $0x254] sm:$0xf]  ;;  %v2378_v34 = vld [vmem:[%s3892_s1 + $0x258] sm:$0xf0] }
  0x82   : > { %900 = vmatmul.bf16.gmra.mxu1 %v3215_v21  ;;  %949 = vmatmul.bf16.gmra.mxu2 %v3217_v22  ;;  %3912 = vst [vmem:[#allocation10_spill] sm:$0xff] %v3487_v35 }
  0x83   : > { %1226 = vmatpush.bf16.msra.mxu0 %v2285_v52 }
  0x85   : > { %998 = vmatmul.bf16.gmra.mxu3 %v3219_v23  ;;  %1047 = vmatmul.bf16.gmra.mxu0 %v3225_v26 }
  0x87   : > { %1227 = vmatpush.bf16.msra.mxu0 %v2277_v2  ;;  %v2389_v2 = vor.u32 %v2555_v63, %v2386_v0  ;;  %v2381_v0 = vor.u32 %v2553_v29, %v2378_v34 }
  0x89   : > { %1270 = vmatpush.bf16.msrb.mxu1 %v2389_v2 }
  0x8d   : > { %1271 = vmatpush.bf16.msrb.mxu1 %v2381_v0 }
  0x92   : > { %905 = vmatmul.bf16.gmra.mxu1 %v3241_v42  ;;  %954 = vmatmul.bf16.gmra.mxu2 %v3243_v43 }
  0x95   : > { %1003 = vmatmul.bf16.gmra.mxu3 %v3245_v46  ;;  %1052 = vmatmul.bf16.gmra.mxu0 %v3257_v57 }
  0xa2   : > { %910 = vmatmul.bf16.gmra.mxu1 %v3315_v39  ;;  %959 = vmatmul.bf16.gmra.mxu2 %v3317_v48 }
  0xa5   : > { %1008 = vmatmul.bf16.gmra.mxu3 %v3328_v56  ;;  %1057 = vmatmul.bf16.gmra.mxu0 %v3343_v4 }
  0xaf   : > { %v3426_v19 = vpop.f32.mrf.mxu1 }
  0xb2   : > { %915 = vmatmul.bf16.gmra.mxu1 %v3413_v14  ;;  %964 = vmatmul.bf16.gmra.mxu2 %v3415_v15  ;;  %v837_v38 = vpop.f32.mrf.mxu0 }
  0xb5   : > { %1013 = vmatmul.bf16.gmra.mxu3 %v3428_v20  ;;  %v3452_v59 = vpop.f32.mrf.mxu2  ;;  %1062 = vmatmul.bf16.gmra.mxu0 %v3437_v30 }
  0xb7   : > { %v3463_v1 = vpop.f32.mrf.mxu1 }
  0xb8   : > { %v3454_v60 = vpop.f32.mrf.mxu3 }
  0xba   : > { %v839_v5 = vpop.f32.mrf.mxu0 }
  0xbd   : > { %v3471_v17 = vpop.f32.mrf.mxu2 }
  0xbf   : > { %v3479_v27 = vpop.f32.mrf.mxu1 }
  0xc0   : > { %v3473_v18 = vpop.f32.mrf.mxu3 }
  0xc2   : > { %920 = vmatmul.bf16.gmra.mxu1 %v3475_v24  ;;  %969 = vmatmul.bf16.gmra.mxu2 %v3477_v25  ;;  %v842_v36 = vpop.f32.mrf.mxu0 }
  0xc5   : > { %1018 = vmatmul.bf16.gmra.mxu3 %v3481_v28  ;;  %v3490_v50 = vpop.f32.mrf.mxu2  ;;  %1067 = vmatmul.bf16.gmra.mxu0 %v3487_v35 }
  0xc7   : > { %v3495_v52 = vpop.f32.mrf.mxu1 }
  0xc8   : > { %v3492_v51 = vpop.f32.mrf.mxu3 }
  0xca   : > { %v844_v3 = vpop.f32.mrf.mxu0 }
  0xcd   : > { %v3503_v9 = vpop.f32.mrf.mxu2 }
  0xcf   : > { %v886_v12 = vpop.f32.mrf.mxu1 }
  0xd0   : > { %v3505_v10 = vpop.f32.mrf.mxu3  ;;  %v887_v13 = vadd.f32 %v886_v12, %v837_v38 }
  0xd1   : > { %3913 = vst [vmem:[#allocation11_spill] sm:$0xff] %v3505_v10 }
  0xd2   : > { %1081 = vmatmul.bf16.vlgmr.msra.gmra.mxu1 %v2963_v62  ;;  %1130 = vmatmul.bf16.vlgmr.msra.gmra.mxu2 %v3137_v31  ;;  %v1033_v16 = vpop.f32.mrf.mxu0 }
  0xd5   : > { %1179 = vmatmul.bf16.vlgmr.msra.gmra.mxu3 %v3139_v32  ;;  %v935_v63 = vpop.f32.mrf.mxu2  ;;  %1228 = vmatmul.bf16.vlgmr.msra.gmra.mxu0 %v3141_v33 }
  0xd6   : > { %v936_v2 = vadd.f32 %v935_v63, %v887_v13 }
  0xd7   : > { %v888_v62 = vpop.f32.mrf.mxu1 }
  0xd8   : > { %v984_v35 = vpop.f32.mrf.mxu3  ;;  %v889_v31 = vadd.f32 %v888_v62, %v839_v5 }
  0xd9   : > { %v985_v38 = vadd.f32 %v984_v35, %v936_v2  ;;  %v2551_v35 = vld [vmem:[%s3892_s1 + $0x244] sm:$0xf] }
  0xda   : > { %v1035_v32 = vpop.f32.mrf.mxu0 }
  0xdb   : > { %v1034_v30 = vadd.f32 %v1033_v16, %v985_v38  ;;  %v2549_v38 = vld [vmem:[%s3892_s1 + $0x234] sm:$0xf] }
  0xdd   : > { %v937_v12 = vpop.f32.mrf.mxu2  ;;  %v1350_v37 = vmul.f32 0.1, %v1034_v30  ;;  %vm1318_vm0 = vcmp.gt.f32.partialorder %v1034_v30, 0.0 }
  0xde   : > { %v938_v4 = vadd.f32 %v937_v12, %v889_v31 }
  0xdf   : > { %v891_v26 = vpop.f32.mrf.mxu1 }
  0xe0   : > { %v986_v57 = vpop.f32.mrf.mxu3  ;;  %v892_v11 = vadd.f32 %v891_v26, %v842_v36  ;;  %v2370_v26 = vld [vmem:[%s3892_s1 + $0x248] sm:$0xf0] }
  0xe1   : > { %v987_v58 = vadd.f32 %v986_v57, %v938_v4 }
  0xe2   : > { %1086 = vmatmul.bf16.gmra.mxu1 %v3079_v61  ;;  %1135 = vmatmul.bf16.gmra.mxu2 %v3163_v53  ;;  %v1038_v33 = vpop.f32.mrf.mxu0 }
  0xe3   : > { %v1036_v10 = vadd.f32 %v1035_v32, %v987_v58  ;;  %v3526_v58 = vsel %vm1318_vm0, %v1034_v30, %v1350_v37 }
  0xe5   : > { %1184 = vmatmul.bf16.gmra.mxu3 %v3165_v54  ;;  %vm1320_vm1 = vcmp.gt.f32.partialorder %v1036_v10, 0.0  ;;  %v1352_v5 = vmul.f32 0.1, %v1036_v10  ;;  %v940_v13 = vpop.f32.mrf.mxu2  ;;  %1233 = vmatmul.bf16.gmra.mxu0 %v3167_v55  ;;  %v2373_v54 = vor.u32 %v2551_v35, %v2370_v26 }
  0xe6   : > { %v941_v53 = vadd.f32 %v940_v13, %v892_v11 }
  0xe7   : > { %v3528_v61 = vsel %vm1320_vm1, %v1036_v10, %v1352_v5  ;;  %v893_v36 = vpop.f32.mrf.mxu1  ;;  %1272 = vmatpush.bf16.msrb.mxu1 %v2373_v54 }
  0xe8   : > { %v989_v57 = vpop.f32.mrf.mxu3  ;;  %v1414_v4 = vpack.c.bf16 %v3528_v61, %v3526_v58  ;;  %v894_v16 = vadd.f32 %v893_v36, %v844_v3 }
  0xe9   : > { %v990_v29 = vadd.f32 %v989_v57, %v941_v53 }
  0xea   : > { %v1040_v34 = vpop.f32.mrf.mxu0 }
  0xeb   : > { %v1039_v0 = vadd.f32 %v1038_v33, %v990_v29 }
  0xed   : > { %v942_v63 = vpop.f32.mrf.mxu2  ;;  %v1354_v62 = vmul.f32 0.1, %v1039_v0  ;;  %vm1322_vm2 = vcmp.gt.f32.partialorder %v1039_v0, 0.0 }
  0xee   : > { %v943_v2 = vadd.f32 %v942_v63, %v894_v16 }
  0xef   : > { %v896_v30 = vpop.f32.mrf.mxu1 }
  0xf0   : > { %v991_v37 = vpop.f32.mrf.mxu3  ;;  %v897_v10 = vadd.f32 %v896_v30, %v3426_v19  ;;  %v2362_v19 = vld [vmem:[%s3892_s1 + $0x238] sm:$0xf0] }
  0xf1   : > { %v992_v11 = vadd.f32 %v991_v37, %v943_v2  ;;  %v2547_v37 = vld [vmem:[%s3892_s1 + $0x224] sm:$0xf] }
  0xf2   : > { %1091 = vmatmul.bf16.gmra.mxu1 %v2926_v44  ;;  %1140 = vmatmul.bf16.gmra.mxu2 %v3189_v6  ;;  %v1043_v55 = vpop.f32.mrf.mxu0  ;;  %v2365_v44 = vor.u32 %v2549_v38, %v2362_v19  ;;  %v3544_v6 = vsel %vm1322_vm2, %v1039_v0, %v1354_v62  ;;  %vm1510_vm2 = vcmask 261120  }
  0xf3   : > { %v1041_v31 = vadd.f32 %v1040_v34, %v992_v11 }
  0xf4   : > { %1273 = vmatpush.bf16.msrb.mxu1 %v2365_v44 }
  0xf5   : > { %1189 = vmatmul.bf16.gmra.mxu3 %v3191_v7  ;;  %vm1324_vm3 = vcmp.gt.f32.partialorder %v1041_v31, 0.0  ;;  %v1356_v3 = vmul.f32 0.1, %v1041_v31  ;;  %v945_v32 = vpop.f32.mrf.mxu2  ;;  %1238 = vmatmul.bf16.gmra.mxu0 %v3193_v8 }
  0xf6   : > { %v946_v12 = vadd.f32 %v945_v32, %v897_v10 }
  0xf7   : > { %v3546_v7 = vsel %vm1324_vm3, %v1041_v31, %v1356_v3  ;;  %v898_v5 = vpop.f32.mrf.mxu1 }
  0xf8   : > { %v994_v33 = vpop.f32.mrf.mxu3  ;;  %v1416_v35 = vpack.c.bf16 %v3546_v7, %v3544_v6  ;;  %v899_v13 = vadd.f32 %v898_v5, %v3463_v1  ;;  %v2566_v5 = vld [vmem:[%s3893_s2 + $0x38] sm:$0xff] }
  0xf9   : > { %v995_v26 = vadd.f32 %v994_v33, %v946_v12  ;;  %1535 = vmatpush.bf16.msrb.mxu2 %v2566_v5 }
  0xfa   : > { %v1045_v53 = vpop.f32.mrf.mxu0 }
  0xfb   : > { %v1044_v54 = vadd.f32 %v1043_v55, %v995_v26 }
  0xfd   : > { %v947_v57 = vpop.f32.mrf.mxu2  ;;  %v1358_v63 = vmul.f32 0.1, %v1044_v54  ;;  %vm1326_vm4 = vcmp.gt.f32.partialorder %v1044_v54, 0.0 }
  0xfe   : > { %v948_v36 = vadd.f32 %v947_v57, %v899_v13 }
  0xff   : > { %v901_v29 = vpop.f32.mrf.mxu1 }
 0x100   : > { %v996_v16 = vpop.f32.mrf.mxu3  ;;  %v902_v8 = vadd.f32 %v901_v29, %v3479_v27  ;;  %v2354_v27 = vld [vmem:[%s3892_s1 + $0x228] sm:$0xf0] }
 0x101   : > { %v997_v34 = vadd.f32 %v996_v16, %v948_v36 }
 0x102   : > { %1096 = vmatmul.bf16.gmra.mxu1 %v3042_v40  ;;  %1145 = vmatmul.bf16.gmra.mxu2 %v3215_v21  ;;  %v1048_v1 = vpop.f32.mrf.mxu0  ;;  %v2357_v40 = vor.u32 %v2547_v37, %v2354_v27  ;;  %v3562_v21 = vsel %vm1326_vm4, %v1044_v54, %v1358_v63  ;;  %v2545_v54 = vld [vmem:[%s3892_s1 + $0x214] sm:$0xf] }
 0x103   : > { %v1046_v0 = vadd.f32 %v1045_v53, %v997_v34 }
 0x104   : > { %1274 = vmatpush.bf16.msrb.mxu1 %v2357_v40 }
 0x105   : > { %1194 = vmatmul.bf16.gmra.mxu3 %v3217_v22  ;;  %vm1328_vm5 = vcmp.gt.f32.partialorder %v1046_v0, 0.0  ;;  %v1360_v2 = vmul.f32 0.1, %v1046_v0  ;;  %v950_v30 = vpop.f32.mrf.mxu2  ;;  %1243 = vmatmul.bf16.gmra.mxu0 %v3219_v23 }
 0x106   : > { %v951_v10 = vadd.f32 %v950_v30, %v902_v8  ;;  %v2563_v30 = vld [vmem:[%s3893_s2 + $0x20] sm:$0xff] }
 0x107   : > { %v3564_v22 = vsel %vm1328_vm5, %v1046_v0, %v1360_v2  ;;  %v903_v62 = vpop.f32.mrf.mxu1  ;;  %v2564_v0 = vld [vmem:[%s3893_s2 + $0x28] sm:$0xff] }
 0x108   : > { %v999_v11 = vpop.f32.mrf.mxu3  ;;  %v1418_v31 = vpack.c.bf16 %v3564_v22, %v3562_v21  ;;  %v904_v55 = vadd.f32 %v903_v62, %v3495_v52 }
 0x109   : > { %v1000_v3 = vadd.f32 %v999_v11, %v951_v10 }
 0x10a   : > { %v1050_v38 = vpop.f32.mrf.mxu0 }
 0x10b   : > { %v1049_v19 = vadd.f32 %v1048_v1, %v1000_v3 }
 0x10d   : > { %v952_v32 = vpop.f32.mrf.mxu2  ;;  %v1362_v13 = vmul.f32 0.1, %v1049_v19  ;;  %vm1330_vm6 = vcmp.gt.f32.partialorder %v1049_v19, 0.0 }
 0x10e   : > { %v953_v12 = vadd.f32 %v952_v32, %v904_v55  ;;  %v2562_v55 = vld [vmem:[%s3893_s2 + $0x18] sm:$0xff] }
 0x10f   : > { %v906_v44 = vpop.f32.mrf.mxu1  ;;  %v3586_v29 = vsel %vm1330_vm6, %v1049_v19, %v1362_v13 }
 0x110   : > { %v1001_v33 = vpop.f32.mrf.mxu3  ;;  %v907_v53 = vadd.f32 %v906_v44, %v3452_v59 }
 0x111   : > { %v1002_v23 = vadd.f32 %v1001_v33, %v953_v12  ;;  %v2543_v12 = vld [vmem:[%s3892_s1 + $0x204] sm:$0xf] }
 0x112   : > { %1101 = vmatmul.bf16.gmra.mxu1 %v2928_v45  ;;  %1150 = vmatmul.bf16.gmra.mxu2 %v3241_v42  ;;  %v1053_v52 = vpop.f32.mrf.mxu0  ;;  %v2346_v45 = vld [vmem:[%s3892_s1 + $0x218] sm:$0xf0]  ;;  %v2565_v42 = vld [vmem:[%s3893_s2 + $0x30] sm:$0xff] }
 0x113   : > { %v1051_v26 = vadd.f32 %v1050_v38, %v1002_v23  ;;  %v2349_v59 = vor.u32 %v2545_v54, %v2346_v45  ;;  %1536 = vmatpush.bf16.msrb.mxu2 %v2565_v42 }
 0x115   : > { %1199 = vmatmul.bf16.gmra.mxu3 %v3243_v43  ;;  %vm1332_vm7 = vcmp.gt.f32.partialorder %v1051_v26, 0.0  ;;  %v1364_v57 = vmul.f32 0.1, %v1051_v26  ;;  %v955_v36 = vpop.f32.mrf.mxu2  ;;  %1248 = vmatmul.bf16.gmra.mxu0 %v3245_v46 }
 0x116   : > { %v956_v43 = vadd.f32 %v955_v36, %v907_v53  ;;  %1275 = vmatpush.bf16.msrb.mxu1 %v2349_v59  ;;  %v2559_v36 = vld [vmem:[%s3893_s2] sm:$0xff] }
 0x117   : > { %v3588_v8 = vsel %vm1332_vm7, %v1051_v26, %v1364_v57  ;;  %v908_v34 = vpop.f32.mrf.mxu1  ;;  %1537 = vmatpush.bf16.msrb.mxu2 %v2564_v0 }
 0x118   : > { %v1004_v16 = vpop.f32.mrf.mxu3  ;;  %v1420_v63 = vpack.c.bf16 %v3588_v8, %v3586_v29  ;;  %v909_v46 = vadd.f32 %v908_v34, %v3471_v17  ;;  %v3920_v29 = vld [vmem:[#allocation8_spill] sm:$0xff] }
 0x119   : > { %v1005_v1 = vadd.f32 %v1004_v16, %v956_v43 }
 0x11a   : > { %v1055_v2 = vpop.f32.mrf.mxu0 }
 0x11b   : > { %v1054_v27 = vadd.f32 %v1053_v52, %v1005_v1  ;;  %1538 = vmatpush.bf16.msrb.mxu2 %v2563_v30  ;;  %v2560_v52 = vld [vmem:[%s3893_s2 + $0x8] sm:$0xff] }
 0x11d   : > { %v957_v37 = vpop.f32.mrf.mxu2  ;;  %v1366_v3 = vmul.f32 0.1, %v1054_v27  ;;  %vm1334_vm8 = vcmp.gt.f32.partialorder %v1054_v27, 0.0 }
 0x11e   : > { %v958_v10 = vadd.f32 %v957_v37, %v909_v46 }
 0x11f   : > { %v911_v40 = vpop.f32.mrf.mxu1  ;;  %1539 = vmatpush.bf16.msrb.mxu2 %v2562_v55  ;;  %v3616_v23 = vsel %vm1334_vm8, %v1054_v27, %v1366_v3 }
 0x120   : > { %v1006_v11 = vpop.f32.mrf.mxu3  ;;  %v912_v32 = vadd.f32 %v911_v40, %v3490_v50 }
 0x121   : > { %v1007_v62 = vadd.f32 %v1006_v11, %v958_v10 }
 0x122   : > { %1106 = vmatmul.bf16.gmra.mxu1 %v3044_v41  ;;  %1155 = vmatmul.bf16.gmra.mxu2 %v3315_v39  ;;  %v1058_v17 = vpop.f32.mrf.mxu0  ;;  %v2338_v41 = vld [vmem:[%s3892_s1 + $0x208] sm:$0xf0]  ;;  %v2561_v39 = vld [vmem:[%s3893_s2 + $0x10] sm:$0xff] }
 0x123   : > { %v1056_v38 = vadd.f32 %v1055_v2, %v1007_v62  ;;  %v2341_v50 = vor.u32 %v2543_v12, %v2338_v41  ;;  %1540 = vmatpush.bf16.msrb.mxu2 %v2561_v39 }
 0x125   : > { %1204 = vmatmul.bf16.gmra.mxu3 %v3317_v48  ;;  %vm1336_vm9 = vcmp.gt.f32.partialorder %v1056_v38, 0.0  ;;  %v1368_v19 = vmul.f32 0.1, %v1056_v38  ;;  %v960_v33 = vpop.f32.mrf.mxu2  ;;  %1253 = vmatmul.bf16.gmra.mxu0 %v3328_v56 }
 0x126   : > { %v961_v48 = vadd.f32 %v960_v33, %v912_v32  ;;  %1276 = vmatpush.bf16.msrb.mxu1 %v2341_v50 }
 0x127   : > { %v3618_v5 = vsel %vm1336_vm9, %v1056_v38, %v1368_v19  ;;  %v913_v13 = vpop.f32.mrf.mxu1  ;;  %1541 = vmatpush.bf16.msrb.mxu2 %v2560_v52 }
 0x128   : > { %v1009_v44 = vpop.f32.mrf.mxu3  ;;  %v1422_v26 = vpack.c.bf16 %v3618_v5, %v3616_v23  ;;  %v914_v56 = vadd.f32 %v913_v13, %v3503_v9 }
 0x129   : > { %v1010_v53 = vadd.f32 %v1009_v44, %v961_v48 }
 0x12a   : > { %v1060_v57 = vpop.f32.mrf.mxu0 }
 0x12b   : > { %v1059_v45 = vadd.f32 %v1058_v17, %v1010_v53  ;;  %1542 = vmatpush.bf16.msrb.mxu2 %v2559_v36 }
 0x12d   : > { %v962_v54 = vpop.f32.mrf.mxu2  ;;  %v1370_v34 = vmul.f32 0.1, %v1059_v45  ;;  %vm1338_vm10 = vcmp.gt.f32.partialorder %v1059_v45, 0.0 }
 0x12e   : > { %v963_v42 = vadd.f32 %v962_v54, %v914_v56 }
 0x12f   : > { %v916_v16 = vpop.f32.mrf.mxu1  ;;  %v3634_v27 = vsel %vm1338_vm10, %v1059_v45, %v1370_v34 }
 0x130   : > { %v1011_v43 = vpop.f32.mrf.mxu3  ;;  %v917_v1 = vadd.f32 %v916_v16, %v3454_v60  ;;  %v3915_v16 = vld [vmem:[#allocation3_spill] sm:$0xff] }
 0x131   : > { %v1012_v59 = vadd.f32 %v1011_v43, %v963_v42 }
 0x132   : > { %1111 = vmatmul.bf16.gmra.mxu1 %v2939_v49  ;;  %1160 = vmatmul.bf16.gmra.mxu2 %v3413_v14  ;;  %v1063_v9 = vpop.f32.mrf.mxu0 }
 0x133   : > { %v1061_v0 = vadd.f32 %v1060_v57, %v1012_v59 }
 0x135   : > { %1209 = vmatmul.bf16.gmra.mxu3 %v3415_v15  ;;  %vm1340_vm11 = vcmp.gt.f32.partialorder %v1061_v0, 0.0  ;;  %v1372_v2 = vmul.f32 0.1, %v1061_v0  ;;  %v965_v46 = vpop.f32.mrf.mxu2  ;;  %1258 = vmatmul.bf16.gmra.mxu0 %v3428_v20  ;;  %v2568_v20 = vld [vmem:[%s3893_s2 + $0x48] sm:$0xff] }
 0x136   : > { %v966_v37 = vadd.f32 %v965_v46, %v917_v1  ;;  %1590 = vmatpush.bf16.msrb.mxu3 %v2568_v20 }
 0x137   : > { %v3636_v10 = vsel %vm1340_vm11, %v1061_v0, %v1372_v2  ;;  %v918_v49 = vpop.f32.mrf.mxu1 }
 0x138   : > { %v1014_v30 = vpop.f32.mrf.mxu3  ;;  %v1424_v14 = vpack.c.bf16 %v3636_v10, %v3634_v27  ;;  %v919_v40 = vadd.f32 %v918_v49, %v3473_v18  ;;  %v3922_v27 = vld [vmem:[#allocation10_spill] sm:$0xff] }
 0x139   : > { %v1015_v11 = vadd.f32 %v1014_v30, %v966_v37  ;;  %v3916_v30 = vld [vmem:[#allocation4_spill] sm:$0xff] }
 0x13a   : > { %v1065_v15 = vpop.f32.mrf.mxu0 }
 0x13b   : > { %v1064_v62 = vadd.f32 %v1063_v9, %v1015_v11 }
 0x13d   : > { %v967_v60 = vpop.f32.mrf.mxu2  ;;  %v1374_v32 = vmul.f32 0.1, %v1064_v62  ;;  %vm1342_vm12 = vcmp.gt.f32.partialorder %v1064_v62, 0.0 }
 0x13e   : > { %v968_v55 = vadd.f32 %v967_v60, %v919_v40 }
 0x13f   : > { %v921_v38 = vpop.f32.mrf.mxu1  ;;  %v1406_v44 = vsel %vm1342_vm12, %v1064_v62, %v1374_v32 }
 0x140   : > { %v1016_v3 = vpop.f32.mrf.mxu3  ;;  %v922_v18 = vadd.f32 %v921_v38, %v3492_v51  ;;  %v3919_v38 = vld [vmem:[#allocation7_spill] sm:$0xff] }
 0x141   : > { %v1017_v17 = vadd.f32 %v1016_v3, %v968_v55  ;;  %v3918_v55 = vld [vmem:[#allocation6_spill] sm:$0xff] }
 0x142   : > { %1116 = vmatmul.bf16.gmra.mxu1 %v3055_v47  ;;  %1165 = vmatmul.bf16.gmra.mxu2 %v3475_v24  ;;  %v1068_v41 = vpop.f32.mrf.mxu0  ;;  %v3914_v24 = vld [vmem:[#allocation11_spill] sm:$0xff] }
 0x143   : > { %v1066_v19 = vadd.f32 %v1065_v15, %v1017_v17  ;;  %v3917_v15 = vld [vmem:[#allocation5_spill] sm:$0xff] }
 0x145   : > { %1214 = vmatmul.bf16.gmra.mxu3 %v3477_v25  ;;  %vm1344_vm13 = vcmp.gt.f32.partialorder %v1066_v19, 0.0  ;;  %v1376_v12 = vmul.f32 0.1, %v1066_v19  ;;  %v970_v33 = vpop.f32.mrf.mxu2  ;;  %1263 = vmatmul.bf16.gmra.mxu0 %v3481_v28 }
 0x146   : > { %v971_v39 = vadd.f32 %v970_v33, %v922_v18  ;;  %v3921_v18 = vld [vmem:[#allocation9_spill] sm:$0xff] }
 0x147   : > { %v1408_v50 = vsel %vm1344_vm13, %v1066_v19, %v1376_v12  ;;  %v923_v13 = vpop.f32.mrf.mxu1 }
 0x148   : > { %v1019_v48 = vpop.f32.mrf.mxu3  ;;  %v1426_v47 = vpack.c.bf16 %v1408_v50, %v1406_v44  ;;  %v924_v53 = vadd.f32 %v923_v13, %v3914_v24 }
 0x149   : > { %v1020_v52 = vadd.f32 %v1019_v48, %v971_v39 }
 0x14a   : > { %v1070_v36 = vpop.f32.mrf.mxu0 }
 0x14b   : > { %v1069_v25 = vadd.f32 %v1068_v41, %v1020_v52 }
 0x14d   : > { %v972_v57 = vpop.f32.mrf.mxu2  ;;  %v1378_v42 = vmul.f32 0.1, %v1069_v25  ;;  %vm1346_vm14 = vcmp.gt.f32.partialorder %v1069_v25, 0.0 }
 0x14e   : > { %v973_v56 = vadd.f32 %v972_v57, %v924_v53  ;;  %v2570_v57 = vld [vmem:[%s3894_s3 + $0x8] sm:$0xff] }
 0x14f   : > { %v1082_v54 = vpop.f32.mrf.mxu1  ;;  %v1410_v0 = vsel %vm1346_vm14, %v1069_v25, %v1378_v42  ;;  %1735 = vmatpush.bf16.msrb.mxu0 %v2570_v57 }
 0x150   : > { %v1021_v51 = vpop.f32.mrf.mxu3 }
 0x151   : > { %v1022_v45 = vadd.f32 %v1021_v51, %v973_v56 }
 0x152   : > { %1277 = vmatmul.bf16.vlgmr.msrb.gmra.mxu1 %v3915_v16  ;;  %1543 = vmatmul.bf16.vlgmr.msrb.gmra.mxu2 %v1414_v4  ;;  %v1229_v32 = vpop.f32.mrf.mxu0 }
 0x153   : > { %v1071_v43 = vadd.f32 %v1070_v36, %v1022_v45 }
 0x155   : > { %vm1348_vm15 = vcmp.gt.f32.partialorder %v1071_v43, 0.0  ;;  %v1380_v28 = vmul.f32 0.1, %v1071_v43  ;;  %v1131_v59 = vpop.f32.mrf.mxu2 }
 0x156   : > { %v1132_v34 = vadd.f32 %v1131_v59, %v1082_v54 }
 0x157   : > { %v1412_v9 = vsel %vm1348_vm15, %v1071_v43, %v1380_v28  ;;  %v1084_v1 = vpop.f32.mrf.mxu1 }
 0x158   : > { %v1428_v2 = vpack.c.bf16 %v1412_v9, %v1410_v0 }
 0x15a   : > { %v1231_v5 = vpop.f32.mrf.mxu0 }
 0x15d   : > { %v1133_v46 = vpop.f32.mrf.mxu2 }
 0x15e   : > { %v1134_v50 = vadd.f32 %v1133_v46, %v1084_v1 }
 0x15f   : > { %v1087_v37 = vpop.f32.mrf.mxu1 }
 0x162   : > { %1282 = vmatmul.bf16.gmra.mxu1 %v3916_v30  ;;  %1548 = vmatmul.bf16.gmra.mxu2 %v1416_v35  ;;  %v2567_v35 = vld [vmem:[%s3893_s2 + $0x40] sm:$0xff]  ;;  %v1234_v41 = vpop.f32.mrf.mxu0 }
 0x163   : > { %1591 = vmatpush.bf16.msrb.mxu3 %v2567_v35 }
 0x165   : > { %v1136_v49 = vpop.f32.mrf.mxu2 }
 0x166   : > { %v3658_v58 = vadd.f32 %v1136_v49, %v1087_v37 }
 0x167   : > { %v3660_v61 = vpop.f32.mrf.mxu1 }
 0x16a   : > { %v1236_v48 = vpop.f32.mrf.mxu0 }
 0x16d   : > { %v3662_v4 = vpop.f32.mrf.mxu2 }
 0x16f   : > { %v1092_v11 = vpop.f32.mrf.mxu1 }
 0x172   : > { %1287 = vmatmul.bf16.gmra.mxu1 %v3917_v15  ;;  %1553 = vmatmul.bf16.gmra.mxu2 %v1418_v31  ;;  %v1239_v25 = vpop.f32.mrf.mxu0 }
 0x175   : > { %v1141_v40 = vpop.f32.mrf.mxu2 }
 0x176   : > { %v3668_v60 = vadd.f32 %v1141_v40, %v1092_v11 }
 0x177   : > { %v3670_v62 = vpop.f32.mrf.mxu1 }
 0x17a   : > { %v1241_v0 = vpop.f32.mrf.mxu0 }
 0x17d   : > { %v3672_v6 = vpop.f32.mrf.mxu2 }
 0x17f   : > { %v1097_v7 = vpop.f32.mrf.mxu1 }
 0x182   : > { %1292 = vmatmul.bf16.gmra.mxu1 %v3918_v55  ;;  %1558 = vmatmul.bf16.gmra.mxu2 %v1420_v63  ;;  %v1180_v63 = vpop.f32.mrf.mxu3  ;;  %v1244_v40 = vpop.f32.mrf.mxu0 }
 0x183   : > { %v1181_v44 = vadd.f32 %v1180_v63, %v1132_v34  ;;  %v1139_v34 = vadd.f32 %v3662_v4, %v3660_v61  ;;  %v1144_v4 = vadd.f32 %v3672_v6, %v3670_v62 }
 0x185   : > { %v1146_v21 = vpop.f32.mrf.mxu2  ;;  %v1230_v52 = vadd.f32 %v1229_v32, %v1181_v44 }
 0x186   : > { %v3681_v22 = vadd.f32 %v1146_v21, %v1097_v7 }
 0x187   : > { %v3683_v31 = vpop.f32.mrf.mxu1 }
 0x18a   : > { %v1182_v23 = vpop.f32.mrf.mxu3  ;;  %v1246_v32 = vpop.f32.mrf.mxu0 }
 0x18b   : > { %v1183_v24 = vadd.f32 %v1182_v23, %v1134_v50 }
 0x18d   : > { %v3708_v39 = vpop.f32.mrf.mxu2  ;;  %v1232_v56 = vadd.f32 %v1231_v5, %v1183_v24 }
 0x18f   : > { %v3685_v3 = vpop.f32.mrf.mxu1 }
 0x192   : > { %1297 = vmatmul.bf16.gmra.mxu1 %v3919_v38  ;;  %1563 = vmatmul.bf16.gmra.mxu2 %v1422_v26  ;;  %v1185_v12 = vpop.f32.mrf.mxu3  ;;  %v1249_v62 = vpop.f32.mrf.mxu0 }
 0x193   : > { %v1186_v59 = vadd.f32 %v1185_v12, %v3658_v58 }
 0x195   : > { %v1235_v1 = vadd.f32 %v1234_v41, %v1186_v59 }
 0x197   : > { %v3691_v17 = vpop.f32.mrf.mxu1 }
 0x19a   : > { %v1187_v10 = vpop.f32.mrf.mxu3 }
 0x19f   : > { %v3693_v20 = vpop.f32.mrf.mxu1 }
 0x1a2   : > { %1302 = vmatmul.bf16.gmra.mxu1 %v3920_v29  ;;  %1568 = vmatmul.bf16.gmra.mxu2 %v1424_v14 }
 0x1a7   : > { %v3699_v8 = vpop.f32.mrf.mxu1 }
 0x1af   : > { %v3701_v19 = vpop.f32.mrf.mxu1 }
 0x1b2   : > { %1307 = vmatmul.bf16.gmra.mxu1 %v3921_v18  ;;  %1573 = vmatmul.bf16.gmra.mxu2 %v1426_v47  ;;  %v1190_v47 = vpop.f32.mrf.mxu3  ;;  %v1151_v18 = vpop.f32.mrf.mxu2 }
 0x1b3   : > { %v1191_v61 = vadd.f32 %v1190_v47, %v3668_v60 }
 0x1b5   : > { %v1240_v29 = vadd.f32 %v1239_v25, %v1191_v61 }
 0x1b7   : > { %v3704_v26 = vpop.f32.mrf.mxu1 }
 0x1ba   : > { %v1192_v42 = vpop.f32.mrf.mxu3  ;;  %v1153_v47 = vpop.f32.mrf.mxu2 }
 0x1bb   : > { %v1193_v63 = vadd.f32 %v1192_v42, %v1144_v4 }
 0x1bd   : > { %v1242_v5 = vadd.f32 %v1241_v0, %v1193_v63 }
 0x1bf   : > { %v3706_v33 = vpop.f32.mrf.mxu1 }
 0x1c2   : > { %1312 = vmatmul.bf16.gmra.mxu1 %v3922_v27  ;;  %1578 = vmatmul.bf16.gmra.mxu2 %v1428_v2  ;;  %v1188_v2 = vadd.f32 %v1187_v10, %v1139_v34  ;;  %v1195_v37 = vpop.f32.mrf.mxu3  ;;  %v1154_v34 = vadd.f32 %v1153_v47, %v3691_v17 }
 0x1c3   : > { %v1196_v50 = vadd.f32 %v1195_v37, %v3681_v22  ;;  %v1152_v22 = vadd.f32 %v1151_v18, %v3685_v3  ;;  %v2569_v3 = vld [vmem:[%s3894_s3] sm:$0xff] }
 0x1c4   : > { %v1237_v30 = vadd.f32 %v1236_v48, %v1188_v2  ;;  %1736 = vmatpush.bf16.msrb.mxu0 %v2569_v3 }
 0x1c5   : > { %v1245_v24 = vadd.f32 %v1244_v40, %v1196_v50 }
 0x1c7   : > { %v3711_v14 = vpop.f32.mrf.mxu1 }
 0x1ca   : > { %v1197_v21 = vpop.f32.mrf.mxu3 }
 0x1cf   : > { %v1278_v13 = vpop.f32.mrf.mxu1 }
 0x1d0   : > { %v1279_v53 = vadd.f32 %v1278_v13, %v1230_v52  ;;  %v1149_v13 = vadd.f32 %v3708_v39, %v3683_v31 }
 0x1d2   : > { %v1351_v54 = vmul.f32 0.1, %v1279_v53  ;;  %vm1319_vm0 = vcmp.gt.f32.partialorder %v1279_v53, 0.0  ;;  %v1200_v10 = vpop.f32.mrf.mxu3 }
 0x1d3   : > { %v1201_v59 = vadd.f32 %v1200_v10, %v1152_v22 }
 0x1d4   : > { %v1383_v43 = vsel %vm1319_vm0, %v1279_v53, %v1351_v54  ;;  %v1198_v53 = vadd.f32 %v1197_v21, %v1149_v13 }
 0x1d7   : > { %v1280_v51 = vpop.f32.mrf.mxu1 }
 0x1d8   : > { %v1281_v36 = vadd.f32 %v1280_v51, %v1232_v56  ;;  %v1247_v56 = vadd.f32 %v1246_v32, %v1198_v53  ;;  %v1251_v51 = vpop.f32.mrf.mxu0 }
 0x1da   : > { %vm1321_vm1 = vcmp.gt.f32.partialorder %v1281_v36, 0.0  ;;  %v1353_v45 = vmul.f32 0.1, %v1281_v36  ;;  %v1202_v57 = vpop.f32.mrf.mxu3 }
 0x1db   : > { %v1203_v2 = vadd.f32 %v1202_v57, %v1154_v34 }
 0x1dc   : > { %v1385_v16 = vsel %vm1321_vm1, %v1281_v36, %v1353_v45  ;;  %v1156_v36 = vpop.f32.mrf.mxu2 }
 0x1dd   : > { %v1415_v28 = vpack.c.bf16 %v1385_v16, %v1383_v43  ;;  %v1157_v17 = vadd.f32 %v1156_v36, %v3693_v20 }
 0x1df   : > { %v1283_v9 = vpop.f32.mrf.mxu1  ;;  %2438 = vmatmul.msk.bf16.vlgmr.msrb.gmra.mxu3 %vm1510_vm2, %v1415_v28 }
 0x1e0   : > { %v1284_v46 = vadd.f32 %v1283_v9, %v1235_v1  ;;  %v1254_v9 = vpop.f32.mrf.mxu0  ;;  %v1250_v1 = vadd.f32 %v1249_v62, %v1201_v59 }
 0x1e2   : > { %v1355_v11 = vmul.f32 0.1, %v1284_v46  ;;  %vm1323_vm3 = vcmp.gt.f32.partialorder %v1284_v46, 0.0  ;;  %v1205_v16 = vpop.f32.mrf.mxu3 }
 0x1e3   : > { %v1206_v21 = vadd.f32 %v1205_v16, %v1157_v17 }
 0x1e4   : > { %v1387_v58 = vsel %vm1323_vm3, %v1284_v46, %v1355_v11  ;;  %v1158_v46 = vpop.f32.mrf.mxu2 }
 0x1e5   : > { %v1255_v32 = vadd.f32 %v1254_v9, %v1206_v21 }
 0x1e7   : > { %v1285_v49 = vpop.f32.mrf.mxu1 }
 0x1e8   : > { %v1286_v15 = vadd.f32 %v1285_v49, %v1237_v30  ;;  %v1252_v30 = vadd.f32 %v1251_v51, %v1203_v2 }
 0x1ea   : > { %vm1325_vm4 = vcmp.gt.f32.partialorder %v1286_v15, 0.0  ;;  %v1357_v7 = vmul.f32 0.1, %v1286_v15  ;;  %v1207_v49 = vpop.f32.mrf.mxu3 }
 0x1ec   : > { %v1389_v35 = vsel %vm1325_vm4, %v1286_v15, %v1357_v7 }
 0x1ed   : > { %v1417_v55 = vpack.c.bf16 %v1389_v35, %v1387_v58  ;;  %v1256_v58 = vpop.f32.mrf.mxu0  ;;  %v1161_v35 = vpop.f32.mrf.mxu2 }
 0x1ef   : > { %v1288_v38 = vpop.f32.mrf.mxu1  ;;  %2439 = vmatmul.msk.bf16.gmra.mxu3 %vm1510_vm2, %v1417_v55 }
 0x1f0   : > { %v1289_v23 = vadd.f32 %v1288_v38, %v1240_v29  ;;  %v1159_v38 = vadd.f32 %v1158_v46, %v3699_v8 }
 0x1f2   : > { %v1359_v41 = vmul.f32 0.1, %v1289_v23  ;;  %vm1327_vm5 = vcmp.gt.f32.partialorder %v1289_v23, 0.0  ;;  %v1210_v63 = vpop.f32.mrf.mxu3  ;;  %v1208_v18 = vadd.f32 %v1207_v49, %v1159_v38 }
 0x1f4   : > { %v1391_v48 = vsel %vm1327_vm5, %v1289_v23, %v1359_v41 }
 0x1f5   : > { %v1163_v20 = vpop.f32.mrf.mxu2 }
 0x1f6   : > { %v1164_v13 = vadd.f32 %v1163_v20, %v3704_v26 }
 0x1f7   : > { %v1290_v12 = vpop.f32.mrf.mxu1 }
 0x1f8   : > { %v1291_v27 = vadd.f32 %v1290_v12, %v1242_v5  ;;  %v1259_v5 = vpop.f32.mrf.mxu0  ;;  %v1257_v12 = vadd.f32 %v1256_v58, %v1208_v18 }
 0x1fa   : > { %vm1329_vm6 = vcmp.gt.f32.partialorder %v1291_v27, 0.0  ;;  %v1361_v60 = vmul.f32 0.1, %v1291_v27 }
 0x1fc   : > { %v1393_v44 = vsel %vm1329_vm6, %v1291_v27, %v1361_v60  ;;  %v1162_v60 = vadd.f32 %v1161_v35, %v3701_v19 }
 0x1fd   : > { %v1419_v6 = vpack.c.bf16 %v1393_v44, %v1391_v48  ;;  %v1212_v44 = vpop.f32.mrf.mxu3 }
 0x1fe   : > { %v1211_v50 = vadd.f32 %v1210_v63, %v1162_v60  ;;  %v1213_v57 = vadd.f32 %v1212_v44, %v1164_v13 }
 0x1ff   : > { %v1293_v52 = vpop.f32.mrf.mxu1  ;;  %2440 = vmatmul.msk.bf16.gmra.mxu3 %vm1510_vm2, %v1419_v6 }
 0x200   : > { %v1294_v25 = vadd.f32 %v1293_v52, %v1245_v24  ;;  %v1261_v47 = vpop.f32.mrf.mxu0  ;;  %v1166_v24 = vpop.f32.mrf.mxu2  ;;  %v1260_v53 = vadd.f32 %v1259_v5, %v1211_v50 }
 0x201   : > { %v1262_v51 = vadd.f32 %v1261_v47, %v1213_v57 }
 0x202   : > { %v1363_v45 = vmul.f32 0.1, %v1294_v25  ;;  %vm1331_vm7 = vcmp.gt.f32.partialorder %v1294_v25, 0.0 }
 0x204   : > { %v1395_v31 = vsel %vm1331_vm7, %v1294_v25, %v1363_v45 }
 0x207   : > { %v1295_v54 = vpop.f32.mrf.mxu1 }
 0x208   : > { %v1296_v42 = vadd.f32 %v1295_v54, %v1247_v56  ;;  %v1215_v56 = vpop.f32.mrf.mxu3  ;;  %v1264_v45 = vpop.f32.mrf.mxu0 }
 0x209   : > { %v1168_v22 = vpop.f32.mrf.mxu2 }
 0x20a   : > { %vm1333_vm8 = vcmp.gt.f32.partialorder %v1296_v42, 0.0  ;;  %v1365_v43 = vmul.f32 0.1, %v1296_v42 }
 0x20c   : > { %v1397_v39 = vsel %vm1333_vm8, %v1296_v42, %v1365_v43  ;;  %v1167_v42 = vadd.f32 %v1166_v24, %v3706_v33 }
 0x20d   : > { %v1421_v28 = vpack.c.bf16 %v1397_v39, %v1395_v31 }
 0x20e   : > { %v1216_v16 = vadd.f32 %v1215_v56, %v1167_v42 }
 0x20f   : > { %v1298_v0 = vpop.f32.mrf.mxu1  ;;  %2441 = vmatmul.msk.bf16.gmra.mxu3 %vm1510_vm2, %v1421_v28  ;;  %v1169_v28 = vadd.f32 %v1168_v22, %v3711_v14 }
 0x210   : > { %v1299_v37 = vadd.f32 %v1298_v0, %v1250_v1  ;;  %v1217_v59 = vpop.f32.mrf.mxu3  ;;  %v1265_v0 = vadd.f32 %v1264_v45, %v1216_v16  ;;  %v1266_v1 = vpop.f32.mrf.mxu0 }
 0x211   : > { %v1218_v9 = vadd.f32 %v1217_v59, %v1169_v28  ;;  %v1544_v2 = vpop.f32.mrf.mxu2 }
 0x212   : > { %v1367_v15 = vmul.f32 0.1, %v1299_v37  ;;  %vm1335_vm9 = vcmp.gt.f32.partialorder %v1299_v37, 0.0 }
 0x214   : > { %v1399_v55 = vsel %vm1335_vm9, %v1299_v37, %v1367_v15  ;;  %v1267_v37 = vadd.f32 %v1266_v1, %v1218_v9 }
 0x217   : > { %v1300_v11 = vpop.f32.mrf.mxu1 }
 0x218   : > { %v1301_v40 = vadd.f32 %v1300_v11, %v1252_v30 }
 0x219   : > { %v1546_v14 = vpop.f32.mrf.mxu2 }
 0x21a   : > { %vm1337_vm10 = vcmp.gt.f32.partialorder %v1301_v40, 0.0  ;;  %v1369_v7 = vmul.f32 0.1, %v1301_v40 }
 0x21c   : > { %v1401_v61 = vsel %vm1337_vm10, %v1301_v40, %v1369_v7 }
 0x21d   : > { %v1423_v4 = vpack.c.bf16 %v1401_v61, %v1399_v55 }
 0x21f   : > { %v1303_v29 = vpop.f32.mrf.mxu1  ;;  %2442 = vmatmul.msk.bf16.gmra.mxu3 %vm1510_vm2, %v1423_v4 }
 0x220   : > { %v1304_v23 = vadd.f32 %v1303_v29, %v1255_v32 }
 0x221   : > { %v1549_v17 = vpop.f32.mrf.mxu2 }
 0x222   : > { %v1371_v27 = vmul.f32 0.1, %v1304_v23  ;;  %vm1339_vm11 = vcmp.gt.f32.partialorder %v1304_v23, 0.0 }
 0x224   : > { %v1403_v8 = vsel %vm1339_vm11, %v1304_v23, %v1371_v27 }
 0x227   : > { %v1305_v41 = vpop.f32.mrf.mxu1 }
 0x228   : > { %v1306_v10 = vadd.f32 %v1305_v41, %v1257_v12 }
 0x229   : > { %v1551_v7 = vpop.f32.mrf.mxu2 }
 0x22a   : > { %vm1341_vm12 = vcmp.gt.f32.partialorder %v1306_v10, 0.0  ;;  %v1373_v48 = vmul.f32 0.1, %v1306_v10 }
 0x22c   : > { %v1405_v62 = vsel %vm1341_vm12, %v1306_v10, %v1373_v48 }
 0x22d   : > { %v1425_v6 = vpack.c.bf16 %v1405_v62, %v1403_v8 }
 0x22f   : > { %v1308_v52 = vpop.f32.mrf.mxu1  ;;  %2443 = vmatmul.msk.bf16.gmra.mxu3 %vm1510_vm2, %v1425_v6 }
 0x230   : > { %v1309_v25 = vadd.f32 %v1308_v52, %v1260_v53 }
 0x231   : > { %v1554_v21 = vpop.f32.mrf.mxu2 }
 0x232   : > { %v1375_v54 = vmul.f32 0.1, %v1309_v25  ;;  %vm1343_vm13 = vcmp.gt.f32.partialorder %v1309_v25, 0.0 }
 0x234   : > { %v1407_v43 = vsel %vm1343_vm13, %v1309_v25, %v1375_v54 }
 0x237   : > { %v1310_v19 = vpop.f32.mrf.mxu1 }
 0x238   : > { %v1311_v36 = vadd.f32 %v1310_v19, %v1262_v51 }
 0x239   : > { %v1556_v23 = vpop.f32.mrf.mxu2 }
 0x23a   : > { %vm1345_vm14 = vcmp.gt.f32.partialorder %v1311_v36, 0.0  ;;  %v1377_v26 = vmul.f32 0.1, %v1311_v36 }
 0x23c   : > { %v1409_v31 = vsel %vm1345_vm14, %v1311_v36, %v1377_v26 }
 0x23d   : > { %v1427_v39 = vpack.c.bf16 %v1409_v31, %v1407_v43 }
 0x23f   : > { %v1313_v34 = vpop.f32.mrf.mxu1  ;;  %2444 = vmatmul.msk.bf16.gmra.mxu3 %vm1510_vm2, %v1427_v39 }
 0x240   : > { %v1314_v46 = vadd.f32 %v1313_v34, %v1265_v0 }
 0x241   : > { %v1559_v48 = vpop.f32.mrf.mxu2 }
 0x242   : > { %v1379_v3 = vmul.f32 0.1, %v1314_v46  ;;  %vm1347_vm15 = vcmp.gt.f32.partialorder %v1314_v46, 0.0 }
 0x244   : > { %v1411_v11 = vsel %vm1347_vm15, %v1314_v46, %v1379_v3 }
 0x247   : > { %v1315_v33 = vpop.f32.mrf.mxu1 }
 0x248   : > { %v1316_v30 = vadd.f32 %v1315_v33, %v1267_v37 }
 0x249   : > { %v1561_v6 = vpop.f32.mrf.mxu2 }
 0x24a   : > { %vm1349_vm0 = vcmp.gt.f32.partialorder %v1316_v30, 0.0  ;;  %v1381_v49 = vmul.f32 0.1, %v1316_v30 }
 0x24c   : > { %v1413_v15 = vsel %vm1349_vm0, %v1316_v30, %v1381_v49 }
 0x24d   : > { %v1429_v40 = vpack.c.bf16 %v1413_v15, %v1411_v11 }
 0x24f   : > { %2445 = vmatmul.msk.bf16.gmra.mxu3 %vm1510_vm2, %v1429_v40 }
 0x251   : > { %v1564_v56 = vpop.f32.mrf.mxu2 }
 0x259   : > { %v1566_v42 = vpop.f32.mrf.mxu2 }
 0x261   : > { %v1569_v16 = vpop.f32.mrf.mxu2 }
 0x262   : > { %v1593_v58 = vpop.f32.mrf.mxu3 }
 0x263   : > { %v1594_v35 = vadd.f32 %v1593_v58, %v1544_v2 }
 0x265   : > { %v1649_v61 = vmul.f32 0.1, %v1594_v35  ;;  %vm1633_vm1 = vcmp.gt.f32.partialorder %v1594_v35, 0.0 }
 0x267   : > { %v1665_v29 = vsel %vm1633_vm1, %v1594_v35, %v1649_v61 }
 0x269   : > { %v1571_v46 = vpop.f32.mrf.mxu2 }
 0x26a   : > { %v1595_v55 = vpop.f32.mrf.mxu3 }
 0x26b   : > { %v1596_v4 = vadd.f32 %v1595_v55, %v1546_v14 }
 0x26d   : > { %vm1634_vm3 = vcmp.gt.f32.partialorder %v1596_v4, 0.0  ;;  %v1650_v38 = vmul.f32 0.1, %v1596_v4 }
 0x26f   : > { %v1666_v63 = vsel %vm1634_vm3, %v1596_v4, %v1650_v38  ;;  %vm1778_vm3 = vcmask 7168  }
 0x270   : > { %v1681_v32 = vpack.c.bf16 %v1666_v63, %v1665_v29 }
 0x271   : > { %v1574_v11 = vpop.f32.mrf.mxu2 }
 0x272   : > { %v1598_v18 = vpop.f32.mrf.mxu3  ;;  %2454 = vmatmul.msk.bf16.vlgmr.msrb.gmra.mxu0 %vm1510_vm2, %v1681_v32 }
 0x273   : > { %v1599_v5 = vadd.f32 %v1598_v18, %v1549_v17 }
 0x275   : > { %v1651_v20 = vmul.f32 0.1, %v1599_v5  ;;  %vm1635_vm4 = vcmp.gt.f32.partialorder %v1599_v5, 0.0 }
 0x277   : > { %v1667_v10 = vsel %vm1635_vm4, %v1599_v5, %v1651_v20 }
 0x279   : > { %v1576_v58 = vpop.f32.mrf.mxu2 }
 0x27a   : > { %v1600_v12 = vpop.f32.mrf.mxu3 }
 0x27b   : > { %v1601_v41 = vadd.f32 %v1600_v12, %v1551_v7 }
 0x27d   : > { %vm1636_vm5 = vcmp.gt.f32.partialorder %v1601_v41, 0.0  ;;  %v1652_v27 = vmul.f32 0.1, %v1601_v41 }
 0x27f   : > { %v1668_v60 = vsel %vm1636_vm5, %v1601_v41, %v1652_v27 }
 0x280   : > { %v1682_v44 = vpack.c.bf16 %v1668_v60, %v1667_v10 }
 0x281   : > { %v1579_v63 = vpop.f32.mrf.mxu2 }
 0x282   : > { %v1603_v8 = vpop.f32.mrf.mxu3  ;;  %2455 = vmatmul.msk.bf16.gmra.mxu0 %vm1510_vm2, %v1682_v44 }
 0x283   : > { %v1604_v62 = vadd.f32 %v1603_v8, %v1554_v21 }
 0x285   : > { %v1653_v13 = vmul.f32 0.1, %v1604_v62  ;;  %vm1637_vm6 = vcmp.gt.f32.partialorder %v1604_v62, 0.0 }
 0x287   : > { %v1669_v24 = vsel %vm1637_vm6, %v1604_v62, %v1653_v13 }
 0x289   : > { %v1581_v5 = vpop.f32.mrf.mxu2 }
 0x28a   : > { %v1605_v50 = vpop.f32.mrf.mxu3 }
 0x28b   : > { %v1606_v47 = vadd.f32 %v1605_v50, %v1556_v23 }
 0x28d   : > { %vm1638_vm7 = vcmp.gt.f32.partialorder %v1606_v47, 0.0  ;;  %v1654_v52 = vmul.f32 0.1, %v1606_v47 }
 0x28f   : > { %v1670_v53 = vsel %vm1638_vm7, %v1606_v47, %v1654_v52 }
 0x290   : > { %v1683_v57 = vpack.c.bf16 %v1670_v53, %v1669_v24 }
 0x292   : > { %v1608_v25 = vpop.f32.mrf.mxu3  ;;  %2456 = vmatmul.msk.bf16.gmra.mxu0 %vm1510_vm2, %v1683_v57 }
 0x293   : > { %v1609_v51 = vadd.f32 %v1608_v25, %v1559_v48 }
 0x295   : > { %v1655_v54 = vmul.f32 0.1, %v1609_v51  ;;  %vm1639_vm8 = vcmp.gt.f32.partialorder %v1609_v51, 0.0 }
 0x297   : > { %v1671_v22 = vsel %vm1639_vm8, %v1609_v51, %v1655_v54 }
 0x29a   : > { %v1610_v19 = vpop.f32.mrf.mxu3 }
 0x29b   : > { %v1611_v36 = vadd.f32 %v1610_v19, %v1561_v6 }
 0x29d   : > { %vm1640_vm9 = vcmp.gt.f32.partialorder %v1611_v36, 0.0  ;;  %v1656_v45 = vmul.f32 0.1, %v1611_v36 }
 0x29f   : > { %v1672_v26 = vsel %vm1640_vm9, %v1611_v36, %v1656_v45 }
 0x2a0   : > { %v1684_v43 = vpack.c.bf16 %v1672_v26, %v1671_v22 }
 0x2a2   : > { %v1613_v31 = vpop.f32.mrf.mxu3  ;;  %2457 = vmatmul.msk.bf16.gmra.mxu0 %vm1510_vm2, %v1684_v43 }
 0x2a3   : > { %v1614_v39 = vadd.f32 %v1613_v31, %v1564_v56 }
 0x2a5   : > { %v1657_v59 = vmul.f32 0.1, %v1614_v39  ;;  %vm1641_vm10 = vcmp.gt.f32.partialorder %v1614_v39, 0.0 }
 0x2a7   : > { %v1673_v9 = vsel %vm1641_vm10, %v1614_v39, %v1657_v59 }
 0x2aa   : > { %v1615_v28 = vpop.f32.mrf.mxu3 }
 0x2ab   : > { %v1616_v34 = vadd.f32 %v1615_v28, %v1566_v42 }
 0x2ad   : > { %vm1642_vm11 = vcmp.gt.f32.partialorder %v1616_v34, 0.0  ;;  %v1658_v0 = vmul.f32 0.1, %v1616_v34 }
 0x2af   : > { %v1674_v1 = vsel %vm1642_vm11, %v1616_v34, %v1658_v0 }
 0x2b0   : > { %v1685_v2 = vpack.c.bf16 %v1674_v1, %v1673_v9 }
 0x2b2   : > { %v1618_v37 = vpop.f32.mrf.mxu3  ;;  %2458 = vmatmul.msk.bf16.gmra.mxu0 %vm1510_vm2, %v1685_v2 }
 0x2b3   : > { %v1619_v33 = vadd.f32 %v1618_v37, %v1569_v16 }
 0x2b5   : > { %v1659_v30 = vmul.f32 0.1, %v1619_v33  ;;  %vm1643_vm12 = vcmp.gt.f32.partialorder %v1619_v33, 0.0 }
 0x2b7   : > { %v1675_v40 = vsel %vm1643_vm12, %v1619_v33, %v1659_v30 }
 0x2ba   : > { %v1620_v3 = vpop.f32.mrf.mxu3 }
 0x2bb   : > { %v1621_v49 = vadd.f32 %v1620_v3, %v1571_v46 }
 0x2bd   : > { %vm1644_vm13 = vcmp.gt.f32.partialorder %v1621_v49, 0.0  ;;  %v1660_v15 = vmul.f32 0.1, %v1621_v49 }
 0x2bf   : > { %v1676_v14 = vsel %vm1644_vm13, %v1621_v49, %v1660_v15 }
 0x2c0   : > { %v1686_v17 = vpack.c.bf16 %v1676_v14, %v1675_v40 }
 0x2c2   : > { %v1623_v7 = vpop.f32.mrf.mxu3  ;;  %2459 = vmatmul.msk.bf16.gmra.mxu0 %vm1510_vm2, %v1686_v17 }
 0x2c3   : > { %v1624_v35 = vadd.f32 %v1623_v7, %v1574_v11 }
 0x2c5   : > { %v1661_v61 = vmul.f32 0.1, %v1624_v35  ;;  %vm1645_vm14 = vcmp.gt.f32.partialorder %v1624_v35, 0.0 }
 0x2c7   : > { %v1677_v38 = vsel %vm1645_vm14, %v1624_v35, %v1661_v61 }
 0x2ca   : > { %v1625_v55 = vpop.f32.mrf.mxu3 }
 0x2cb   : > { %v1626_v4 = vadd.f32 %v1625_v55, %v1576_v58 }
 0x2cd   : > { %vm1646_vm15 = vcmp.gt.f32.partialorder %v1626_v4, 0.0  ;;  %v1662_v21 = vmul.f32 0.1, %v1626_v4 }
 0x2cf   : > { %v1678_v29 = vsel %vm1646_vm15, %v1626_v4, %v1662_v21 }
 0x2d0   : > { %v1687_v32 = vpack.c.bf16 %v1678_v29, %v1677_v38 }
 0x2d2   : > { %v1628_v18 = vpop.f32.mrf.mxu3  ;;  %2460 = vmatmul.msk.bf16.gmra.mxu0 %vm1510_vm2, %v1687_v32 }
 0x2d3   : > { %v1629_v23 = vadd.f32 %v1628_v18, %v1579_v63 }
 0x2d5   : > { %v1663_v20 = vmul.f32 0.1, %v1629_v23  ;;  %vm1647_vm0 = vcmp.gt.f32.partialorder %v1629_v23, 0.0 }
 0x2d7   : > { %v1679_v10 = vsel %vm1647_vm0, %v1629_v23, %v1663_v20 }
 0x2da   : > { %v1630_v12 = vpop.f32.mrf.mxu3 }
 0x2db   : > { %v1631_v41 = vadd.f32 %v1630_v12, %v1581_v5 }
 0x2dd   : > { %vm1648_vm1 = vcmp.gt.f32.partialorder %v1631_v41, 0.0  ;;  %v1664_v27 = vmul.f32 0.1, %v1631_v41 }
 0x2df   : > { %v1680_v60 = vsel %vm1648_vm1, %v1631_v41, %v1664_v27 }
 0x2e0   : > { %v1688_v48 = vpack.c.bf16 %v1680_v60, %v1679_v10 }
 0x2e2   : > { %2461 = vmatmul.msk.bf16.gmra.mxu0 %vm1510_vm2, %v1688_v48 }
 0x2ef   : > { %v1738_v44 = vpop.f32.mrf.mxu0 }
 0x2f0   : > { %1779 = vst.msk [vmem:[%s3753_s28] sm:$0xff] %vm1778_vm3, %v1738_v44 }
 0x2f7   : > { %v1740_v8 = vpop.f32.mrf.mxu0 }
 0x2f8   : > { %1780 = vst.msk [vmem:[%s3753_s28 + $0x8] sm:$0xff] %vm1778_vm3, %v1740_v8 }
 0x2ff   : > { %v1743_v62 = vpop.f32.mrf.mxu0 }
 0x300   : > { %1781 = vst.msk [vmem:[%s3753_s28 + $0x10] sm:$0xff] %vm1778_vm3, %v1743_v62 }
 0x307   : > { %v1745_v6 = vpop.f32.mrf.mxu0 }
 0x308   : > { %1782 = vst.msk [vmem:[%s3753_s28 + $0x18] sm:$0xff] %vm1778_vm3, %v1745_v6 }
 0x30f   : > { %v1748_v50 = vpop.f32.mrf.mxu0 }
 0x310   : > { %1783 = vst.msk [vmem:[%s3753_s28 + $0x20] sm:$0xff] %vm1778_vm3, %v1748_v50 }
 0x317   : > { %v1750_v13 = vpop.f32.mrf.mxu0 }
 0x318   : > { %1784 = vst.msk [vmem:[%s3753_s28 + $0x28] sm:$0xff] %vm1778_vm3, %v1750_v13 }
 0x31f   : > { %v1753_v47 = vpop.f32.mrf.mxu0 }
 0x320   : > { %1785 = vst.msk [vmem:[%s3753_s28 + $0x30] sm:$0xff] %vm1778_vm3, %v1753_v47 }
 0x327   : > { %v1755_v52 = vpop.f32.mrf.mxu0 }
 0x328   : > { %1786 = vst.msk [vmem:[%s3753_s28 + $0x38] sm:$0xff] %vm1778_vm3, %v1755_v52 }
 0x32f   : > { %v1758_v24 = vpop.f32.mrf.mxu0 }
 0x330   : > { %1787 = vst.msk [vmem:[%s3753_s28 + $0x40] sm:$0xff] %vm1778_vm3, %v1758_v24 }
 0x337   : > { %v1760_v53 = vpop.f32.mrf.mxu0 }
 0x338   : > { %1788 = vst.msk [vmem:[%s3753_s28 + $0x48] sm:$0xff] %vm1778_vm3, %v1760_v53 }
 0x33f   : > { %v1763_v57 = vpop.f32.mrf.mxu0 }
 0x340   : > { %1789 = vst.msk [vmem:[%s3753_s28 + $0x50] sm:$0xff] %vm1778_vm3, %v1763_v57 }
 0x347   : > { %v1765_v25 = vpop.f32.mrf.mxu0 }
 0x348   : > { %1790 = vst.msk [vmem:[%s3753_s28 + $0x58] sm:$0xff] %vm1778_vm3, %v1765_v25 }
 0x34f   : > { %v1768_v56 = vpop.f32.mrf.mxu0 }
 0x350   : > { %1791 = vst.msk [vmem:[%s3753_s28 + $0x60] sm:$0xff] %vm1778_vm3, %v1768_v56 }
 0x357   : > { %v1770_v51 = vpop.f32.mrf.mxu0 }
 0x358   : > { %1792 = vst.msk [vmem:[%s3753_s28 + $0x68] sm:$0xff] %vm1778_vm3, %v1770_v51 }
 0x35f   : > { %v1773_v19 = vpop.f32.mrf.mxu0 }
 0x360   : > { %1793 = vst.msk [vmem:[%s3753_s28 + $0x70] sm:$0xff] %vm1778_vm3, %v1773_v19 }
 0x364   : > { %1801 = sbr.rel (!%p2825_p4) target bundleno = 921 (0x399), region = 40 }
 0x367   : > { %v1775_v54 = vpop.f32.mrf.mxu0 }
 0x368   : > { %1794 = vst.msk [vmem:[%s3753_s28 + $0x78] sm:$0xff] %vm1778_vm3, %v1775_v54 }
 0x369   : > { %s3932_s15 = smov (!%p1804_p8, %s1803_s15), 16 }
 0x36a   : > { %s2464_s11 = sshll.u32 %s3932_s15, 3 }
 0x36b   : > { %p2467_p9 = scmp.eq.s32.totalorder %s2464_s11, 0 }
 0x36c   : > { %s3800_s7 = sshrl.u32 (!%p2467_p9), %s3932_s15, 4 }
 0x36d   : > { %1812 = sbr.rel (%p2467_p9) target bundleno = 921 (0x399), region = 44  ;;  %p2468_p10 = scmp.le.s32.totalorder (!%p2467_p9), %s3800_s7, 0 }
 0x372   : > { %2027 = sbr.rel (%p2468_p10) target bundleno = 904 (0x388), region = 120  ;;  %s3923_s18 = smov (!%p2468_p10), %s3794_s6 }
 0x373   : > { %s3924_s23 = smov (!%p2468_p10), %s3753_s28  ;;  %s3809_s14 = smov (!%p2468_p10), 0  }
 0x374   : > { %s3811_s8 = smov (!%p2468_p10), 0  }
 0x377 LB: >> { %v1905_v36 = vld [vmem:[%s2749_s23] sm:$0xff]  ;;  %v1907_v45 = vld [vmem:[%s2749_s23 + $0x8] sm:$0xff]  ;;  %v1909_v42 = vld [vmem:[%s2749_s23 + $0x10] sm:$0xff]  ;;  %s1937_s9 = sadd.s32 1, %s2753_s14  ;;  %s1899_s8 = sadd.s32 1, %s2757_s8   ;;  %s2757_s8 = sphi %s3811_s8, %s1899_s8   ;;  %s2753_s14 = sphi %s3809_s14, %s3927_s14   ;;  %s2749_s23 = sphi %s3924_s23, %s3926_s23   ;;  %s2745_s18 = sphi %s3923_s18, %s3925_s18  }
 0x378   : >> { %1906 = vst [vmem:[%s2745_s18] sm:$0xff] %v1905_v36  ;;  %v1911_v22 = vld [vmem:[%s2749_s23 + $0x18] sm:$0xff]  ;;  %p1938_p11 = scmp.ge.s32.totalorder %s1937_s9, %s3800_s7  ;;  %v1913_v26 = vld [vmem:[%s2749_s23 + $0x20] sm:$0xff]  ;;  %v1915_v43 = vld [vmem:[%s2749_s23 + $0x28] sm:$0xff]  ;;  %p1898_p12 = scmp.ge.s32.totalorder %s1899_s8, %s3800_s7 }
 0x379   : >> { %1908 = vst [vmem:[%s2745_s18 + $0x8] sm:$0xff] %v1907_v45  ;;  %v1917_v31 = vld [vmem:[%s2749_s23 + $0x30] sm:$0xff]  ;;  %v1919_v39 = vld [vmem:[%s2749_s23 + $0x38] sm:$0xff]  ;;  %v1921_v16 = vld [vmem:[%s2749_s23 + $0x40] sm:$0xff] }
 0x37a   : >> { %1910 = vst [vmem:[%s2745_s18 + $0x10] sm:$0xff] %v1909_v42  ;;  %s3934_s9 = smov (%p1938_p11, %s1937_s9), 0  ;;  %v1923_v28 = vld [vmem:[%s2749_s23 + $0x48] sm:$0xff]  ;;  %v1925_v59 = vld [vmem:[%s2749_s23 + $0x50] sm:$0xff]  ;;  %v1927_v34 = vld [vmem:[%s2749_s23 + $0x58] sm:$0xff] }
 0x37b   : >> { %1912 = vst [vmem:[%s2745_s18 + $0x18] sm:$0xff] %v1911_v22  ;;  %s2469_s10 = sshll.u32 %s3934_s9, 7  ;;  %v1929_v0 = vld [vmem:[%s2749_s23 + $0x60] sm:$0xff]  ;;  %v1931_v9 = vld [vmem:[%s2749_s23 + $0x68] sm:$0xff]  ;;  %v1933_v1 = vld [vmem:[%s2749_s23 + $0x70] sm:$0xff]  ;;  %s3927_s14 = smov %s3934_s9 }
 0x37c   : >> { %1914 = vst [vmem:[%s2745_s18 + $0x20] sm:$0xff] %v1913_v26  ;;  %s1942_s12 = scalar_lea.vmem %s3753_s28, %s2469_s10 [#allocation2]   ;;  %s1943_s13 = scalar_lea.vmem %s3794_s6, %s2469_s10   ;;  %v1935_v2 = vld [vmem:[%s2749_s23 + $0x78] sm:$0xff] }
 0x37d   : >> { %1916 = vst [vmem:[%s2745_s18 + $0x28] sm:$0xff] %v1915_v43  ;;  %s3926_s23 = smov %s1942_s12 }
 0x37e   : >> { %1918 = vst [vmem:[%s2745_s18 + $0x30] sm:$0xff] %v1917_v31 }
 0x37f   : >> { %1920 = vst [vmem:[%s2745_s18 + $0x38] sm:$0xff] %v1919_v39 }
 0x380   : >> { %1922 = vst [vmem:[%s2745_s18 + $0x40] sm:$0xff] %v1921_v16 }
 0x381   : >> { %1924 = vst [vmem:[%s2745_s18 + $0x48] sm:$0xff] %v1923_v28 }
 0x382   : >> { %1926 = vst [vmem:[%s2745_s18 + $0x50] sm:$0xff] %v1925_v59 }
 0x383   : >> { %1928 = vst [vmem:[%s2745_s18 + $0x58] sm:$0xff] %v1927_v34  ;;  %1901 = sbr.rel (!%p1898_p12) target bundleno = 887 (0x377), region = 126 }
 0x384   : >> { %1930 = vst [vmem:[%s2745_s18 + $0x60] sm:$0xff] %v1929_v0 }
 0x385   : >> { %1932 = vst [vmem:[%s2745_s18 + $0x68] sm:$0xff] %v1931_v9 }
 0x386   : >> { %1934 = vst [vmem:[%s2745_s18 + $0x70] sm:$0xff] %v1933_v1 }
 0x387   : >> { %1936 = vst [vmem:[%s2745_s18 + $0x78] sm:$0xff] %v1935_v2  ;;  %s3925_s18 = smov %s1943_s13 }
 0x388 PF: > { %s3873_s17 = sand.u32 15, %s3932_s15   ;;  %s2572_s20 = sshll.u32 %s3800_s7, 7 }
 0x389   : > { %s1948_s21 = scalar_lea.vmem %s3753_s28, %s2572_s20 [#allocation2]   ;;  %s1950_s24 = scalar_lea.vmem %s3794_s6, %s2572_s20  }
 0x38a   : > { %p2474_p13 = scmp.le.s32.totalorder %s3873_s17, 0 }
 0x38b   : > { %s2759_s25 = smov (!%p2474_p13), %s1950_s24   ;;  %s2763_s26 = smov (!%p2474_p13), %s1948_s21  }
 0x38c   : > { %2041 = sbr.rel (%p2474_p13) target bundleno = 921 (0x399), region = 131  ;;  %s2767_s27 = smov (!%p2474_p13), 0  }
 0x38d   : > { %s2771_s29 = smov (!%p2474_p13), 0  }
 0x391 LB: >> { %v1960_v46 = vld [vmem:[%s2765_s26] sm:$0xff]  ;;  %s1962_s15 = sadd.s32 1, %s2769_s27  ;;  %s1954_s29 = sadd.s32 1, %s2773_s29   ;;  %s2773_s29 = sphi %s2771_s29, %s1954_s29   ;;  %s2769_s27 = sphi %s2767_s27, %s2768_s27   ;;  %s2765_s26 = sphi %s2763_s26, %s1967_s26   ;;  %s2761_s25 = sphi %s2759_s25, %s1968_s25  }
 0x392   : >> { %1961 = vst [vmem:[%s2761_s25] sm:$0xff] %v1960_v46  ;;  %p1963_p0 = scmp.ge.s32.totalorder %s1962_s15, %s3873_s17  ;;  %p1953_p1 = scmp.ge.s32.totalorder %s1954_s29, %s3873_s17 }
 0x394   : >> { %s3936_s15 = smov (%p1963_p0, %s1962_s15), 0  ;;  %1956 = sbr.rel (!%p1953_p1) target bundleno = 913 (0x391), region = 137 }
 0x395   : >> { %s2475_s28 = sshll.u32 %s3936_s15, 3  ;;  %s2768_s27 = smov %s3936_s15  }
 0x396   : >> { %s1967_s26 = scalar_lea.vmem %s1948_s21, %s2475_s28 [#allocation2]   ;;  %s1968_s25 = scalar_lea.vmem %s1950_s24, %s2475_s28  }
 0x399 PF: > { %p11_p2 = scmp.ge.s32.totalorder %s2815_s19, 4   ;;  %s3928_s15 = smov %s2737_s16 }
 0x39a   : > { %s3929_s16 = smov %s2823_s22  ;;  %s3930_s17 = smov %s2815_s19 }
 0x39b   :  { %13 = sbr.rel (!%p11_p2) target bundleno = 2 (0x2), region = 148 }

</bundles_post_ra>
